<compile_context>
chip_gen: v7x
topology: tpu7x:2x2x1
jax: 0.10.0
libtpu: 0.0.40
codegen_flags: <defaults>
</compile_context>

<pallas_src>
import jax
import jax.numpy as jnp
from jax.experimental import pallas as pl
from jax.experimental.pallas import tpu as pltpu


def _lstm_cell(z, c_prev, H):
    """Gate order in z is [i, f, o, g] (host-permuted from PyTorch [i,f,g,o]):
    a single sigmoid over the first 3H lanes + a single tanh over the last H."""
    sig = jax.nn.sigmoid(z[:, :3 * H])
    g = jnp.tanh(z[:, 3 * H:])
    i_g = sig[:, 0:H]
    f_g = sig[:, H:2 * H]
    o_g = sig[:, 2 * H:3 * H]
    c_new = f_g * c_prev + i_g * g
    h_new = o_g * jnp.tanh(c_new)
    return h_new, c_new


def _make_decoder_kernel(num_layers, hidden_size, seq_len, batch_pad):
    L, H, T, B = num_layers, hidden_size, seq_len, batch_pad

    def kernel(*refs):
        idx = 0
        x_ref = refs[idx]; idx += 1                  # (T*B, I)     bf16, time-major
        h0_ref = refs[idx]; idx += 1                 # (L, B, H)    f32
        c0_ref = refs[idx]; idx += 1                 # (L, B, H)    f32
        wih0_ref = refs[idx]; idx += 1               # (I, 4H)      bf16
        whh0_ref = refs[idx]; idx += 1               # (H, 4H)      bf16
        bias0_ref = refs[idx]; idx += 1              # (1, 4H)      f32
        upper = refs[idx: idx + 3 * (L - 1)]         # per layer: wih (H,4H) bf16, whh (H,4H) bf16, bias (1,4H) f32
        idx += 3 * (L - 1)
        wfc_ref = refs[idx]; idx += 1                # (H, Opad)    bf16, zero-padded lanes
        bfc_ref = refs[idx]; idx += 1                # (1, Opad)    f32
        out_ref = refs[idx]; idx += 1                # (T*B, Opad)  f32, lane-dense
        h_out_ref = refs[idx]; idx += 1              # (L, B, H)    f32 (aliased with h0)
        c_out_ref = refs[idx]; idx += 1              # (L, B, H)    f32 (aliased with c0)
        z0_scr = refs[idx]; idx += 1                 # (T*B, 4H)    f32 scratch
        htop_scr = refs[idx]; idx += 1               # (T*B, H)     f32 scratch

        # ---- Hoist all loop-invariant loads / broadcasts out of the time loop.
        whh0 = whh0_ref[...]
        wih_up = [upper[3 * k + 0][...] for k in range(L - 1)]
        whh_up = [upper[3 * k + 1][...] for k in range(L - 1)]
        b_up = [jnp.broadcast_to(upper[3 * k + 2][...], (B, 4 * H))
                for k in range(L - 1)]

        # ---- Layer-0 input projection for ALL timesteps in one MXU call,
        # streamed into VMEM scratch (not held live across the unrolled loop).
        z0_scr[...] = (jnp.dot(x_ref[...], wih0_ref[...],
                               preferred_element_type=jnp.float32)
                       + bias0_ref[...])

        # ---- h/c state carried as values (vregs) through the static time loop.
        h = [h0_ref[l] for l in range(L)]
        c = [c0_ref[l] for l in range(L)]

        for t in range(T):                            # static full unroll (T small)
            # layer 0: only the recurrent matmul sits on the critical path.
            z = z0_scr[pl.ds(t * B, B), :] + jnp.dot(
                h[0].astype(jnp.bfloat16), whh0,
                preferred_element_type=jnp.float32)
            h[0], c[0] = _lstm_cell(z, c[0], H)
            layer_in = h[0]

            # upper layers: two K=H dots, no per-step lane concat / relayout.
            for l in range(1, L):
                z = (jnp.dot(layer_in.astype(jnp.bfloat16), wih_up[l - 1],
                             preferred_element_type=jnp.float32)
                     + jnp.dot(h[l].astype(jnp.bfloat16), whh_up[l - 1],
                               preferred_element_type=jnp.float32)
                     + b_up[l - 1])
                h[l], c[l] = _lstm_cell(z, c[l], H)
                layer_in = h[l]

            # stream top-layer h to scratch; FC happens once after the loop.
            htop_scr[pl.ds(t * B, B), :] = layer_in

        # ---- FC on all timesteps at once; lane-dense (Opad % 128 == 0) store.
        out_ref[...] = (jnp.dot(htop_scr[...].astype(jnp.bfloat16), wfc_ref[...],
                                preferred_element_type=jnp.float32)
                        + bfc_ref[...])

        # ---- Final state written exactly once.
        for l in range(L):
            h_out_ref[l] = h[l]
            c_out_ref[l] = c[l]

    return kernel


def _permute_gates(w, H):
    """Permute the 4H gate blocks on the last axis from PyTorch order
    [i, f, g, o] to [i, f, o, g] (kernel needs one sigmoid + one tanh)."""
    return jnp.concatenate(
        [w[..., :2 * H], w[..., 3 * H:4 * H], w[..., 2 * H:3 * H]], axis=-1)


@jax.jit
def decoder_forward(x, h0, c0, params):
    """x: (B, T, output_size), h0/c0: (num_layers, B, hidden).  Returns
    (out (B,T,output_size), (h (L,B,H), c (L,B,H))) — same as the PyTorch module."""
    B, T, I = x.shape
    L, _, H = h0.shape
    O = params["fc_w"].shape[0]
    O_pad = ((O + 127) // 128) * 128            # lane-dense FC output
    B_pad = ((B + 7) // 8) * 8                  # full sublane groups
    pad_b = B_pad - B

    x_tm = jnp.transpose(x, (1, 0, 2)).astype(jnp.float32)       # (T, B, I)
    h0_p = h0.astype(jnp.float32)
    c0_p = c0.astype(jnp.float32)
    if pad_b:
        x_tm = jnp.pad(x_tm, ((0, 0), (0, pad_b), (0, 0)))
        h0_p = jnp.pad(h0_p, ((0, 0), (0, pad_b), (0, 0)))
        c0_p = jnp.pad(c0_p, ((0, 0), (0, pad_b), (0, 0)))
    x_flat = x_tm.reshape(T * B_pad, I).astype(jnp.bfloat16)

    inputs = [
        x_flat, h0_p, c0_p,
        _permute_gates(params["w_ih"][0].T, H).astype(jnp.bfloat16),      # (I, 4H)
        _permute_gates(params["w_hh"][0].T, H).astype(jnp.bfloat16),      # (H, 4H)
        _permute_gates((params["b_ih"][0] + params["b_hh"][0]
                        ).reshape(1, 4 * H), H).astype(jnp.float32),
    ]
    for l in range(1, L):
        inputs.append(_permute_gates(params["w_ih"][l].T, H).astype(jnp.bfloat16))
        inputs.append(_permute_gates(params["w_hh"][l].T, H).astype(jnp.bfloat16))
        inputs.append(_permute_gates((params["b_ih"][l] + params["b_hh"][l]
                                      ).reshape(1, 4 * H), H).astype(jnp.float32))
    wfc = jnp.zeros((H, O_pad), jnp.bfloat16).at[:, :O].set(
        params["fc_w"].T.astype(jnp.bfloat16))                            # (H, Opad)
    bfc = jnp.zeros((1, O_pad), jnp.float32).at[0, :O].set(params["fc_b"])
    inputs += [wfc, bfc]

    kernel = _make_decoder_kernel(L, H, T, B_pad)
    vmem = pl.BlockSpec(memory_space=pltpu.MemorySpace.VMEM)

    # Whole problem fits in VMEM: single invocation, no grid.
    # TODO(synk): if T/B/H are scaled up, tile x/z0/out over T with a BlockSpec
    # grid axis (weights resident), add a batch-parallel leading grid axis with
    # dimension_semantics=("parallel", ...) so v7x's 2 TensorCores shard it, and
    # budget VMEM against v7x's 64 MiB via pltpu.CompilerParams(vmem_limit_bytes=...).
    out_flat, h_out, c_out = pl.pallas_call(
        kernel,
        out_shape=(
            jax.ShapeDtypeStruct((T * B_pad, O_pad), jnp.float32),
            jax.ShapeDtypeStruct((L, B_pad, H), jnp.float32),
            jax.ShapeDtypeStruct((L, B_pad, H), jnp.float32),
        ),
        in_specs=[vmem] * len(inputs),
        out_specs=(vmem, vmem, vmem),
        scratch_shapes=[
            pltpu.VMEM((T * B_pad, 4 * H), jnp.float32),   # z0 stream
            pltpu.VMEM((T * B_pad, H), jnp.float32),       # top-layer h stream
        ],
        input_output_aliases={1: 1, 2: 2},                 # h0->h_out, c0->c_out
    )(*inputs)

    out = out_flat[:, :O].reshape(T, B_pad, O)[:, :B, :]
    out = jnp.transpose(out, (1, 0, 2))                                   # (B, T, O)
    return out, (h_out[:, :B, :], c_out[:, :B, :])


def init_params(key, output_size, hidden_size, num_layers):
    """Deterministic init matching PyTorch's U(-1/sqrt(H), 1/sqrt(H)) shapes."""
    H, O, L = hidden_size, output_size, num_layers
    k = float(1.0 / (H ** 0.5))
    keys = jax.random.split(key, 4 * L + 2)
    w_ih, w_hh, b_ih, b_hh = [], [], [], []
    for l in range(L):
        in_dim = O if l == 0 else H
        w_ih.append(jax.random.uniform(keys[4 * l + 0], (4 * H, in_dim), jnp.float32, -k, k))
        w_hh.append(jax.random.uniform(keys[4 * l + 1], (4 * H, H), jnp.float32, -k, k))
        b_ih.append(jax.random.uniform(keys[4 * l + 2], (4 * H,), jnp.float32, -k, k))
        b_hh.append(jax.random.uniform(keys[4 * l + 3], (4 * H,), jnp.float32, -k, k))
    fc_w = jax.random.uniform(keys[-2], (O, H), jnp.float32, -k, k)
    fc_b = jax.random.uniform(keys[-1], (O,), jnp.float32, -k, k)
    return dict(w_ih=w_ih, w_hh=w_hh, b_ih=b_ih, b_hh=b_hh, fc_w=fc_w, fc_b=fc_b)


def decoder_reference(x, h0, c0, params):
    """Pure-JAX f32 reference matching torch.nn.LSTM(batch_first=True) + Linear."""
    B, T, I = x.shape
    L, _, H = h0.shape
    h = [h0[l] for l in range(L)]
    c = [c0[l] for l in range(L)]
    outs = []
    for t in range(T):
        inp = x[:, t, :]
        for l in range(L):
            z = (inp @ params["w_ih"][l].T + h[l] @ params["w_hh"][l].T
                 + params["b_ih"][l] + params["b_hh"][l])
            i_g = jax.nn.sigmoid(z[:, 0:H])
            f_g = jax.nn.sigmoid(z[:, H:2 * H])
            g_g = jnp.tanh(z[:, 2 * H:3 * H])
            o_g = jax.nn.sigmoid(z[:, 3 * H:4 * H])
            c[l] = f_g * c[l] + i_g * g_g
            h[l] = o_g * jnp.tanh(c[l])
            inp = h[l]
        outs.append(inp @ params["fc_w"].T + params["fc_b"])
    return jnp.stack(outs, axis=1), (jnp.stack(h), jnp.stack(c))


if __name__ == "__main__":
    B, T = 4, 8                 # batch, sequence length
    output_size = 16            # decoder input == output feature size
    hidden_size = 32
    num_layers = 2

    key = jax.random.PRNGKey(0)
    kx, kh, kc, kp = jax.random.split(key, 4)
    x = jax.random.normal(kx, (B, T, output_size), jnp.float32)
    h0 = jax.random.normal(kh, (num_layers, B, hidden_size), jnp.float32)
    c0 = jax.random.normal(kc, (num_layers, B, hidden_size), jnp.float32)
    params = init_params(kp, output_size, hidden_size, num_layers)

    out, (h_n, c_n) = decoder_forward(x, h0, c0, params)
    jax.block_until_ready((out, h_n, c_n))

    out_ref, (h_ref, c_ref) = decoder_reference(x, h0, c0, params)
    assert out.shape == (B, T, output_size)
    assert h_n.shape == (num_layers, B, hidden_size)
    assert c_n.shape == (num_layers, B, hidden_size)
    # Tolerance sized for bf16 MXU operands accumulated over the T*L recurrence
    # (gate math and accumulation stay f32).
    atol = rtol = 3e-2
    assert jnp.allclose(out, out_ref, atol=atol, rtol=rtol)
    assert jnp.allclose(h_n, h_ref, atol=atol, rtol=rtol)
    assert jnp.allclose(c_n, c_ref, atol=atol, rtol=rtol)

    print("KERNEL_OK")
</pallas_src>

<mosaic_0001>
module attributes {stable_mosaic.version = 11 : i64} {
  func.func @kernel(%arg0: memref<64x16xbf16, #tpu.memory_space<vmem>>, %arg1: memref<2x8x32xf32, #tpu.memory_space<vmem>>, %arg2: memref<2x8x32xf32, #tpu.memory_space<vmem>>, %arg3: memref<16x128xbf16, #tpu.memory_space<vmem>>, %arg4: memref<32x128xbf16, #tpu.memory_space<vmem>>, %arg5: memref<1x128xf32, #tpu.memory_space<vmem>>, %arg6: memref<32x128xbf16, #tpu.memory_space<vmem>>, %arg7: memref<32x128xbf16, #tpu.memory_space<vmem>>, %arg8: memref<1x128xf32, #tpu.memory_space<vmem>>, %arg9: memref<32x128xbf16, #tpu.memory_space<vmem>>, %arg10: memref<1x128xf32, #tpu.memory_space<vmem>>, %arg11: memref<64x128xf32, #tpu.memory_space<vmem>>, %arg12: memref<2x8x32xf32, #tpu.memory_space<vmem>>, %arg13: memref<2x8x32xf32, #tpu.memory_space<vmem>>, %arg14: memref<64x128xf32, #tpu.memory_space<vmem>>, %arg15: memref<64x32xf32, #tpu.memory_space<vmem>>) attributes {dimension_semantics = [], scalar_prefetch = 0 : i64, scratch_operands = 2 : i64, tpu.core_type = #tpu.core_type<tc>} {
    %c0 = arith.constant 0 : index
    %c0_0 = arith.constant 0 : index
    %0 = vector.load %arg4[%c0, %c0_0] : memref<32x128xbf16, #tpu.memory_space<vmem>>, vector<32x128xbf16>
    %c0_1 = arith.constant 0 : index
    %c0_2 = arith.constant 0 : index
    %1 = vector.load %arg6[%c0_1, %c0_2] : memref<32x128xbf16, #tpu.memory_space<vmem>>, vector<32x128xbf16>
    %c0_3 = arith.constant 0 : index
    %c0_4 = arith.constant 0 : index
    %2 = vector.load %arg7[%c0_3, %c0_4] : memref<32x128xbf16, #tpu.memory_space<vmem>>, vector<32x128xbf16>
    %c0_5 = arith.constant 0 : index
    %c0_6 = arith.constant 0 : index
    %3 = vector.load %arg8[%c0_5, %c0_6] : memref<1x128xf32, #tpu.memory_space<vmem>>, vector<1x128xf32>
    %4 = vector.shape_cast %3 : vector<1x128xf32> to vector<1x128xf32>
    %5 = vector.broadcast %4 : vector<1x128xf32> to vector<8x128xf32>
    %c0_7 = arith.constant 0 : index
    %c0_8 = arith.constant 0 : index
    %6 = vector.load %arg0[%c0_7, %c0_8] : memref<64x16xbf16, #tpu.memory_space<vmem>>, vector<64x16xbf16>
    %c0_9 = arith.constant 0 : index
    %c0_10 = arith.constant 0 : index
    %7 = vector.load %arg3[%c0_9, %c0_10] : memref<16x128xbf16, #tpu.memory_space<vmem>>, vector<16x128xbf16>
    %cst = arith.constant dense<0.000000e+00> : vector<64x128xf32>
    %8 = tpu.matmul %6, %7, %cst {dimension_numbers = #tpu.dot_dimension_numbers<[1], [0], [0], [1], [0, 0, 1, 1], [], []>} : vector<64x16xbf16>, vector<16x128xbf16>, vector<64x128xf32> -> vector<64x128xf32>
    %c0_11 = arith.constant 0 : index
    %c0_12 = arith.constant 0 : index
    %9 = vector.load %arg5[%c0_11, %c0_12] : memref<1x128xf32, #tpu.memory_space<vmem>>, vector<1x128xf32>
    %10 = vector.broadcast %9 : vector<1x128xf32> to vector<64x128xf32>
    %11 = arith.addf %8, %10 : vector<64x128xf32>
    %c0_13 = arith.constant 0 : index
    %c0_14 = arith.constant 0 : index
    %12 = vector.load %arg14[%c0_13, %c0_14] : memref<64x128xf32, #tpu.memory_space<vmem>>, vector<64x128xf32>
    tpu.vector_store %arg14[%c0_13, %c0_14], %11 {strides = array<i32>} : memref<64x128xf32, #tpu.memory_space<vmem>>, vector<64x128xf32>,
    %c0_15 = arith.constant 0 : index
    %c0_16 = arith.constant 0 : index
    %c0_17 = arith.constant 0 : index
    %13 = vector.load %arg1[%c0_15, %c0_16, %c0_17] : memref<2x8x32xf32, #tpu.memory_space<vmem>>, vector<1x8x32xf32>
    %14 = vector.shape_cast %13 : vector<1x8x32xf32> to vector<8x32xf32>
    %c1 = arith.constant 1 : index
    %c0_18 = arith.constant 0 : index
    %c0_19 = arith.constant 0 : index
    %15 = vector.load %arg1[%c1, %c0_18, %c0_19] : memref<2x8x32xf32, #tpu.memory_space<vmem>>, vector<1x8x32xf32>
    %16 = vector.shape_cast %15 : vector<1x8x32xf32> to vector<8x32xf32>
    %c0_20 = arith.constant 0 : index
    %c0_21 = arith.constant 0 : index
    %c0_22 = arith.constant 0 : index
    %17 = vector.load %arg2[%c0_20, %c0_21, %c0_22] : memref<2x8x32xf32, #tpu.memory_space<vmem>>, vector<1x8x32xf32>
    %18 = vector.shape_cast %17 : vector<1x8x32xf32> to vector<8x32xf32>
    %c1_23 = arith.constant 1 : index
    %c0_24 = arith.constant 0 : index
    %c0_25 = arith.constant 0 : index
    %19 = vector.load %arg2[%c1_23, %c0_24, %c0_25] : memref<2x8x32xf32, #tpu.memory_space<vmem>>, vector<1x8x32xf32>
    %20 = vector.shape_cast %19 : vector<1x8x32xf32> to vector<8x32xf32>
    %c0_26 = arith.constant 0 : index
    %c0_27 = arith.constant 0 : index
    %21 = vector.load %arg14[%c0_26, %c0_27] : memref<64x128xf32, #tpu.memory_space<vmem>>, vector<8x128xf32>
    %22 = arith.truncf %14 : vector<8x32xf32> to vector<8x32xbf16>
    %cst_28 = arith.constant dense<0.000000e+00> : vector<8x128xf32>
    %23 = tpu.matmul %22, %0, %cst_28 {dimension_numbers = #tpu.dot_dimension_numbers<[1], [0], [0], [1], [0, 0, 1, 1], [], []>} : vector<8x32xbf16>, vector<32x128xbf16>, vector<8x128xf32> -> vector<8x128xf32>
    %24 = arith.addf %21, %23 : vector<8x128xf32>
    %25 = vector.extract_strided_slice %24 {offsets = [0, 0], sizes = [8, 96], strides = [1, 1]} : vector<8x128xf32> to vector<8x96xf32>
    %26 = arith.negf %25 : vector<8x96xf32>
    %27 = math.exp %26 : vector<8x96xf32>
    %cst_29 = arith.constant 1.000000e+00 : f32
    %28 = vector.broadcast %cst_29 : f32 to vector<8x96xf32>
    %29 = arith.addf %28, %27 : vector<8x96xf32>
    %30 = arith.divf %28, %29 : vector<8x96xf32>
    %31 = vector.extract_strided_slice %24 {offsets = [0, 96], sizes = [8, 32], strides = [1, 1]} : vector<8x128xf32> to vector<8x32xf32>
    %32 = math.tanh %31 : vector<8x32xf32>
    %33 = vector.extract_strided_slice %30 {offsets = [0, 0], sizes = [8, 32], strides = [1, 1]} : vector<8x96xf32> to vector<8x32xf32>
    %34 = vector.extract_strided_slice %30 {offsets = [0, 32], sizes = [8, 32], strides = [1, 1]} : vector<8x96xf32> to vector<8x32xf32>
    %35 = vector.extract_strided_slice %30 {offsets = [0, 64], sizes = [8, 32], strides = [1, 1]} : vector<8x96xf32> to vector<8x32xf32>
    %36 = arith.mulf %34, %18 : vector<8x32xf32>
    %37 = arith.mulf %33, %32 : vector<8x32xf32>
    %38 = arith.addf %36, %37 : vector<8x32xf32>
    %39 = math.tanh %38 : vector<8x32xf32>
    %40 = arith.mulf %35, %39 : vector<8x32xf32>
    %41 = arith.truncf %40 : vector<8x32xf32> to vector<8x32xbf16>
    %cst_30 = arith.constant dense<0.000000e+00> : vector<8x128xf32>
    %42 = tpu.matmul %41, %1, %cst_30 {dimension_numbers = #tpu.dot_dimension_numbers<[1], [0], [0], [1], [0, 0, 1, 1], [], []>} : vector<8x32xbf16>, vector<32x128xbf16>, vector<8x128xf32> -> vector<8x128xf32>
    %43 = arith.truncf %16 : vector<8x32xf32> to vector<8x32xbf16>
    %cst_31 = arith.constant dense<0.000000e+00> : vector<8x128xf32>
    %44 = tpu.matmul %43, %2, %cst_31 {dimension_numbers = #tpu.dot_dimension_numbers<[1], [0], [0], [1], [0, 0, 1, 1], [], []>} : vector<8x32xbf16>, vector<32x128xbf16>, vector<8x128xf32> -> vector<8x128xf32>
    %45 = arith.addf %42, %44 : vector<8x128xf32>
    %46 = arith.addf %45, %5 : vector<8x128xf32>
    %47 = vector.extract_strided_slice %46 {offsets = [0, 0], sizes = [8, 96], strides = [1, 1]} : vector<8x128xf32> to vector<8x96xf32>
    %48 = arith.negf %47 : vector<8x96xf32>
    %49 = math.exp %48 : vector<8x96xf32>
    %cst_32 = arith.constant 1.000000e+00 : f32
    %50 = vector.broadcast %cst_32 : f32 to vector<8x96xf32>
    %51 = arith.addf %50, %49 : vector<8x96xf32>
    %52 = arith.divf %50, %51 : vector<8x96xf32>
    %53 = vector.extract_strided_slice %46 {offsets = [0, 96], sizes = [8, 32], strides = [1, 1]} : vector<8x128xf32> to vector<8x32xf32>
    %54 = math.tanh %53 : vector<8x32xf32>
    %55 = vector.extract_strided_slice %52 {offsets = [0, 0], sizes = [8, 32], strides = [1, 1]} : vector<8x96xf32> to vector<8x32xf32>
    %56 = vector.extract_strided_slice %52 {offsets = [0, 32], sizes = [8, 32], strides = [1, 1]} : vector<8x96xf32> to vector<8x32xf32>
    %57 = vector.extract_strided_slice %52 {offsets = [0, 64], sizes = [8, 32], strides = [1, 1]} : vector<8x96xf32> to vector<8x32xf32>
    %58 = arith.mulf %56, %20 : vector<8x32xf32>
    %59 = arith.mulf %55, %54 : vector<8x32xf32>
    %60 = arith.addf %58, %59 : vector<8x32xf32>
    %61 = math.tanh %60 : vector<8x32xf32>
    %62 = arith.mulf %57, %61 : vector<8x32xf32>
    %c0_33 = arith.constant 0 : index
    %c0_34 = arith.constant 0 : index
    %63 = vector.load %arg15[%c0_33, %c0_34] : memref<64x32xf32, #tpu.memory_space<vmem>>, vector<8x32xf32>
    tpu.vector_store %arg15[%c0_33, %c0_34], %62 {strides = array<i32>} : memref<64x32xf32, #tpu.memory_space<vmem>>, vector<8x32xf32>,
    %c8 = arith.constant 8 : index
    %c0_35 = arith.constant 0 : index
    %64 = vector.load %arg14[%c8, %c0_35] : memref<64x128xf32, #tpu.memory_space<vmem>>, vector<8x128xf32>
    %65 = arith.truncf %40 : vector<8x32xf32> to vector<8x32xbf16>
    %cst_36 = arith.constant dense<0.000000e+00> : vector<8x128xf32>
    %66 = tpu.matmul %65, %0, %cst_36 {dimension_numbers = #tpu.dot_dimension_numbers<[1], [0], [0], [1], [0, 0, 1, 1], [], []>} : vector<8x32xbf16>, vector<32x128xbf16>, vector<8x128xf32> -> vector<8x128xf32>
    %67 = arith.addf %64, %66 : vector<8x128xf32>
    %68 = vector.extract_strided_slice %67 {offsets = [0, 0], sizes = [8, 96], strides = [1, 1]} : vector<8x128xf32> to vector<8x96xf32>
    %69 = arith.negf %68 : vector<8x96xf32>
    %70 = math.exp %69 : vector<8x96xf32>
    %cst_37 = arith.constant 1.000000e+00 : f32
    %71 = vector.broadcast %cst_37 : f32 to vector<8x96xf32>
    %72 = arith.addf %71, %70 : vector<8x96xf32>
    %73 = arith.divf %71, %72 : vector<8x96xf32>
    %74 = vector.extract_strided_slice %67 {offsets = [0, 96], sizes = [8, 32], strides = [1, 1]} : vector<8x128xf32> to vector<8x32xf32>
    %75 = math.tanh %74 : vector<8x32xf32>
    %76 = vector.extract_strided_slice %73 {offsets = [0, 0], sizes = [8, 32], strides = [1, 1]} : vector<8x96xf32> to vector<8x32xf32>
    %77 = vector.extract_strided_slice %73 {offsets = [0, 32], sizes = [8, 32], strides = [1, 1]} : vector<8x96xf32> to vector<8x32xf32>
    %78 = vector.extract_strided_slice %73 {offsets = [0, 64], sizes = [8, 32], strides = [1, 1]} : vector<8x96xf32> to vector<8x32xf32>
    %79 = arith.mulf %77, %38 : vector<8x32xf32>
    %80 = arith.mulf %76, %75 : vector<8x32xf32>
    %81 = arith.addf %79, %80 : vector<8x32xf32>
    %82 = math.tanh %81 : vector<8x32xf32>
    %83 = arith.mulf %78, %82 : vector<8x32xf32>
    %84 = arith.truncf %83 : vector<8x32xf32> to vector<8x32xbf16>
    %cst_38 = arith.constant dense<0.000000e+00> : vector<8x128xf32>
    %85 = tpu.matmul %84, %1, %cst_38 {dimension_numbers = #tpu.dot_dimension_numbers<[1], [0], [0], [1], [0, 0, 1, 1], [], []>} : vector<8x32xbf16>, vector<32x128xbf16>, vector<8x128xf32> -> vector<8x128xf32>
    %86 = arith.truncf %62 : vector<8x32xf32> to vector<8x32xbf16>
    %cst_39 = arith.constant dense<0.000000e+00> : vector<8x128xf32>
    %87 = tpu.matmul %86, %2, %cst_39 {dimension_numbers = #tpu.dot_dimension_numbers<[1], [0], [0], [1], [0, 0, 1, 1], [], []>} : vector<8x32xbf16>, vector<32x128xbf16>, vector<8x128xf32> -> vector<8x128xf32>
    %88 = arith.addf %85, %87 : vector<8x128xf32>
    %89 = arith.addf %88, %5 : vector<8x128xf32>
    %90 = vector.extract_strided_slice %89 {offsets = [0, 0], sizes = [8, 96], strides = [1, 1]} : vector<8x128xf32> to vector<8x96xf32>
    %91 = arith.negf %90 : vector<8x96xf32>
    %92 = math.exp %91 : vector<8x96xf32>
    %cst_40 = arith.constant 1.000000e+00 : f32
    %93 = vector.broadcast %cst_40 : f32 to vector<8x96xf32>
    %94 = arith.addf %93, %92 : vector<8x96xf32>
    %95 = arith.divf %93, %94 : vector<8x96xf32>
    %96 = vector.extract_strided_slice %89 {offsets = [0, 96], sizes = [8, 32], strides = [1, 1]} : vector<8x128xf32> to vector<8x32xf32>
    %97 = math.tanh %96 : vector<8x32xf32>
    %98 = vector.extract_strided_slice %95 {offsets = [0, 0], sizes = [8, 32], strides = [1, 1]} : vector<8x96xf32> to vector<8x32xf32>
    %99 = vector.extract_strided_slice %95 {offsets = [0, 32], sizes = [8, 32], strides = [1, 1]} : vector<8x96xf32> to vector<8x32xf32>
    %100 = vector.extract_strided_slice %95 {offsets = [0, 64], sizes = [8, 32], strides = [1, 1]} : vector<8x96xf32> to vector<8x32xf32>
    %101 = arith.mulf %99, %60 : vector<8x32xf32>
    %102 = arith.mulf %98, %97 : vector<8x32xf32>
    %103 = arith.addf %101, %102 : vector<8x32xf32>
    %104 = math.tanh %103 : vector<8x32xf32>
    %105 = arith.mulf %100, %104 : vector<8x32xf32>
    %c8_41 = arith.constant 8 : index
    %c0_42 = arith.constant 0 : index
    %106 = vector.load %arg15[%c8_41, %c0_42] : memref<64x32xf32, #tpu.memory_space<vmem>>, vector<8x32xf32>
    tpu.vector_store %arg15[%c8_41, %c0_42], %105 {strides = array<i32>} : memref<64x32xf32, #tpu.memory_space<vmem>>, vector<8x32xf32>,
    %c16 = arith.constant 16 : index
    %c0_43 = arith.constant 0 : index
    %107 = vector.load %arg14[%c16, %c0_43] : memref<64x128xf32, #tpu.memory_space<vmem>>, vector<8x128xf32>
    %108 = arith.truncf %83 : vector<8x32xf32> to vector<8x32xbf16>
    %cst_44 = arith.constant dense<0.000000e+00> : vector<8x128xf32>
    %109 = tpu.matmul %108, %0, %cst_44 {dimension_numbers = #tpu.dot_dimension_numbers<[1], [0], [0], [1], [0, 0, 1, 1], [], []>} : vector<8x32xbf16>, vector<32x128xbf16>, vector<8x128xf32> -> vector<8x128xf32>
    %110 = arith.addf %107, %109 : vector<8x128xf32>
    %111 = vector.extract_strided_slice %110 {offsets = [0, 0], sizes = [8, 96], strides = [1, 1]} : vector<8x128xf32> to vector<8x96xf32>
    %112 = arith.negf %111 : vector<8x96xf32>
    %113 = math.exp %112 : vector<8x96xf32>
    %cst_45 = arith.constant 1.000000e+00 : f32
    %114 = vector.broadcast %cst_45 : f32 to vector<8x96xf32>
    %115 = arith.addf %114, %113 : vector<8x96xf32>
    %116 = arith.divf %114, %115 : vector<8x96xf32>
    %117 = vector.extract_strided_slice %110 {offsets = [0, 96], sizes = [8, 32], strides = [1, 1]} : vector<8x128xf32> to vector<8x32xf32>
    %118 = math.tanh %117 : vector<8x32xf32>
    %119 = vector.extract_strided_slice %116 {offsets = [0, 0], sizes = [8, 32], strides = [1, 1]} : vector<8x96xf32> to vector<8x32xf32>
    %120 = vector.extract_strided_slice %116 {offsets = [0, 32], sizes = [8, 32], strides = [1, 1]} : vector<8x96xf32> to vector<8x32xf32>
    %121 = vector.extract_strided_slice %116 {offsets = [0, 64], sizes = [8, 32], strides = [1, 1]} : vector<8x96xf32> to vector<8x32xf32>
    %122 = arith.mulf %120, %81 : vector<8x32xf32>
    %123 = arith.mulf %119, %118 : vector<8x32xf32>
    %124 = arith.addf %122, %123 : vector<8x32xf32>
    %125 = math.tanh %124 : vector<8x32xf32>
    %126 = arith.mulf %121, %125 : vector<8x32xf32>
    %127 = arith.truncf %126 : vector<8x32xf32> to vector<8x32xbf16>
    %cst_46 = arith.constant dense<0.000000e+00> : vector<8x128xf32>
    %128 = tpu.matmul %127, %1, %cst_46 {dimension_numbers = #tpu.dot_dimension_numbers<[1], [0], [0], [1], [0, 0, 1, 1], [], []>} : vector<8x32xbf16>, vector<32x128xbf16>, vector<8x128xf32> -> vector<8x128xf32>
    %129 = arith.truncf %105 : vector<8x32xf32> to vector<8x32xbf16>
    %cst_47 = arith.constant dense<0.000000e+00> : vector<8x128xf32>
    %130 = tpu.matmul %129, %2, %cst_47 {dimension_numbers = #tpu.dot_dimension_numbers<[1], [0], [0], [1], [0, 0, 1, 1], [], []>} : vector<8x32xbf16>, vector<32x128xbf16>, vector<8x128xf32> -> vector<8x128xf32>
    %131 = arith.addf %128, %130 : vector<8x128xf32>
    %132 = arith.addf %131, %5 : vector<8x128xf32>
    %133 = vector.extract_strided_slice %132 {offsets = [0, 0], sizes = [8, 96], strides = [1, 1]} : vector<8x128xf32> to vector<8x96xf32>
    %134 = arith.negf %133 : vector<8x96xf32>
    %135 = math.exp %134 : vector<8x96xf32>
    %cst_48 = arith.constant 1.000000e+00 : f32
    %136 = vector.broadcast %cst_48 : f32 to vector<8x96xf32>
    %137 = arith.addf %136, %135 : vector<8x96xf32>
    %138 = arith.divf %136, %137 : vector<8x96xf32>
    %139 = vector.extract_strided_slice %132 {offsets = [0, 96], sizes = [8, 32], strides = [1, 1]} : vector<8x128xf32> to vector<8x32xf32>
    %140 = math.tanh %139 : vector<8x32xf32>
    %141 = vector.extract_strided_slice %138 {offsets = [0, 0], sizes = [8, 32], strides = [1, 1]} : vector<8x96xf32> to vector<8x32xf32>
    %142 = vector.extract_strided_slice %138 {offsets = [0, 32], sizes = [8, 32], strides = [1, 1]} : vector<8x96xf32> to vector<8x32xf32>
    %143 = vector.extract_strided_slice %138 {offsets = [0, 64], sizes = [8, 32], strides = [1, 1]} : vector<8x96xf32> to vector<8x32xf32>
    %144 = arith.mulf %142, %103 : vector<8x32xf32>
    %145 = arith.mulf %141, %140 : vector<8x32xf32>
    %146 = arith.addf %144, %145 : vector<8x32xf32>
    %147 = math.tanh %146 : vector<8x32xf32>
    %148 = arith.mulf %143, %147 : vector<8x32xf32>
    %c16_49 = arith.constant 16 : index
    %c0_50 = arith.constant 0 : index
    %149 = vector.load %arg15[%c16_49, %c0_50] : memref<64x32xf32, #tpu.memory_space<vmem>>, vector<8x32xf32>
    tpu.vector_store %arg15[%c16_49, %c0_50], %148 {strides = array<i32>} : memref<64x32xf32, #tpu.memory_space<vmem>>, vector<8x32xf32>,
    %c24 = arith.constant 24 : index
    %c0_51 = arith.constant 0 : index
    %150 = vector.load %arg14[%c24, %c0_51] : memref<64x128xf32, #tpu.memory_space<vmem>>, vector<8x128xf32>
    %151 = arith.truncf %126 : vector<8x32xf32> to vector<8x32xbf16>
    %cst_52 = arith.constant dense<0.000000e+00> : vector<8x128xf32>
    %152 = tpu.matmul %151, %0, %cst_52 {dimension_numbers = #tpu.dot_dimension_numbers<[1], [0], [0], [1], [0, 0, 1, 1], [], []>} : vector<8x32xbf16>, vector<32x128xbf16>, vector<8x128xf32> -> vector<8x128xf32>
    %153 = arith.addf %150, %152 : vector<8x128xf32>
    %154 = vector.extract_strided_slice %153 {offsets = [0, 0], sizes = [8, 96], strides = [1, 1]} : vector<8x128xf32> to vector<8x96xf32>
    %155 = arith.negf %154 : vector<8x96xf32>
    %156 = math.exp %155 : vector<8x96xf32>
    %cst_53 = arith.constant 1.000000e+00 : f32
    %157 = vector.broadcast %cst_53 : f32 to vector<8x96xf32>
    %158 = arith.addf %157, %156 : vector<8x96xf32>
    %159 = arith.divf %157, %158 : vector<8x96xf32>
    %160 = vector.extract_strided_slice %153 {offsets = [0, 96], sizes = [8, 32], strides = [1, 1]} : vector<8x128xf32> to vector<8x32xf32>
    %161 = math.tanh %160 : vector<8x32xf32>
    %162 = vector.extract_strided_slice %159 {offsets = [0, 0], sizes = [8, 32], strides = [1, 1]} : vector<8x96xf32> to vector<8x32xf32>
    %163 = vector.extract_strided_slice %159 {offsets = [0, 32], sizes = [8, 32], strides = [1, 1]} : vector<8x96xf32> to vector<8x32xf32>
    %164 = vector.extract_strided_slice %159 {offsets = [0, 64], sizes = [8, 32], strides = [1, 1]} : vector<8x96xf32> to vector<8x32xf32>
    %165 = arith.mulf %163, %124 : vector<8x32xf32>
    %166 = arith.mulf %162, %161 : vector<8x32xf32>
    %167 = arith.addf %165, %166 : vector<8x32xf32>
    %168 = math.tanh %167 : vector<8x32xf32>
    %169 = arith.mulf %164, %168 : vector<8x32xf32>
    %170 = arith.truncf %169 : vector<8x32xf32> to vector<8x32xbf16>
    %cst_54 = arith.constant dense<0.000000e+00> : vector<8x128xf32>
    %171 = tpu.matmul %170, %1, %cst_54 {dimension_numbers = #tpu.dot_dimension_numbers<[1], [0], [0], [1], [0, 0, 1, 1], [], []>} : vector<8x32xbf16>, vector<32x128xbf16>, vector<8x128xf32> -> vector<8x128xf32>
    %172 = arith.truncf %148 : vector<8x32xf32> to vector<8x32xbf16>
    %cst_55 = arith.constant dense<0.000000e+00> : vector<8x128xf32>
    %173 = tpu.matmul %172, %2, %cst_55 {dimension_numbers = #tpu.dot_dimension_numbers<[1], [0], [0], [1], [0, 0, 1, 1], [], []>} : vector<8x32xbf16>, vector<32x128xbf16>, vector<8x128xf32> -> vector<8x128xf32>
    %174 = arith.addf %171, %173 : vector<8x128xf32>
    %175 = arith.addf %174, %5 : vector<8x128xf32>
    %176 = vector.extract_strided_slice %175 {offsets = [0, 0], sizes = [8, 96], strides = [1, 1]} : vector<8x128xf32> to vector<8x96xf32>
    %177 = arith.negf %176 : vector<8x96xf32>
    %178 = math.exp %177 : vector<8x96xf32>
    %cst_56 = arith.constant 1.000000e+00 : f32
    %179 = vector.broadcast %cst_56 : f32 to vector<8x96xf32>
    %180 = arith.addf %179, %178 : vector<8x96xf32>
    %181 = arith.divf %179, %180 : vector<8x96xf32>
    %182 = vector.extract_strided_slice %175 {offsets = [0, 96], sizes = [8, 32], strides = [1, 1]} : vector<8x128xf32> to vector<8x32xf32>
    %183 = math.tanh %182 : vector<8x32xf32>
    %184 = vector.extract_strided_slice %181 {offsets = [0, 0], sizes = [8, 32], strides = [1, 1]} : vector<8x96xf32> to vector<8x32xf32>
    %185 = vector.extract_strided_slice %181 {offsets = [0, 32], sizes = [8, 32], strides = [1, 1]} : vector<8x96xf32> to vector<8x32xf32>
    %186 = vector.extract_strided_slice %181 {offsets = [0, 64], sizes = [8, 32], strides = [1, 1]} : vector<8x96xf32> to vector<8x32xf32>
    %187 = arith.mulf %185, %146 : vector<8x32xf32>
    %188 = arith.mulf %184, %183 : vector<8x32xf32>
    %189 = arith.addf %187, %188 : vector<8x32xf32>
    %190 = math.tanh %189 : vector<8x32xf32>
    %191 = arith.mulf %186, %190 : vector<8x32xf32>
    %c24_57 = arith.constant 24 : index
    %c0_58 = arith.constant 0 : index
    %192 = vector.load %arg15[%c24_57, %c0_58] : memref<64x32xf32, #tpu.memory_space<vmem>>, vector<8x32xf32>
    tpu.vector_store %arg15[%c24_57, %c0_58], %191 {strides = array<i32>} : memref<64x32xf32, #tpu.memory_space<vmem>>, vector<8x32xf32>,
    %c32 = arith.constant 32 : index
    %c0_59 = arith.constant 0 : index
    %193 = vector.load %arg14[%c32, %c0_59] : memref<64x128xf32, #tpu.memory_space<vmem>>, vector<8x128xf32>
    %194 = arith.truncf %169 : vector<8x32xf32> to vector<8x32xbf16>
    %cst_60 = arith.constant dense<0.000000e+00> : vector<8x128xf32>
    %195 = tpu.matmul %194, %0, %cst_60 {dimension_numbers = #tpu.dot_dimension_numbers<[1], [0], [0], [1], [0, 0, 1, 1], [], []>} : vector<8x32xbf16>, vector<32x128xbf16>, vector<8x128xf32> -> vector<8x128xf32>
    %196 = arith.addf %193, %195 : vector<8x128xf32>
    %197 = vector.extract_strided_slice %196 {offsets = [0, 0], sizes = [8, 96], strides = [1, 1]} : vector<8x128xf32> to vector<8x96xf32>
    %198 = arith.negf %197 : vector<8x96xf32>
    %199 = math.exp %198 : vector<8x96xf32>
    %cst_61 = arith.constant 1.000000e+00 : f32
    %200 = vector.broadcast %cst_61 : f32 to vector<8x96xf32>
    %201 = arith.addf %200, %199 : vector<8x96xf32>
    %202 = arith.divf %200, %201 : vector<8x96xf32>
    %203 = vector.extract_strided_slice %196 {offsets = [0, 96], sizes = [8, 32], strides = [1, 1]} : vector<8x128xf32> to vector<8x32xf32>
    %204 = math.tanh %203 : vector<8x32xf32>
    %205 = vector.extract_strided_slice %202 {offsets = [0, 0], sizes = [8, 32], strides = [1, 1]} : vector<8x96xf32> to vector<8x32xf32>
    %206 = vector.extract_strided_slice %202 {offsets = [0, 32], sizes = [8, 32], strides = [1, 1]} : vector<8x96xf32> to vector<8x32xf32>
    %207 = vector.extract_strided_slice %202 {offsets = [0, 64], sizes = [8, 32], strides = [1, 1]} : vector<8x96xf32> to vector<8x32xf32>
    %208 = arith.mulf %206, %167 : vector<8x32xf32>
    %209 = arith.mulf %205, %204 : vector<8x32xf32>
    %210 = arith.addf %208, %209 : vector<8x32xf32>
    %211 = math.tanh %210 : vector<8x32xf32>
    %212 = arith.mulf %207, %211 : vector<8x32xf32>
    %213 = arith.truncf %212 : vector<8x32xf32> to vector<8x32xbf16>
    %cst_62 = arith.constant dense<0.000000e+00> : vector<8x128xf32>
    %214 = tpu.matmul %213, %1, %cst_62 {dimension_numbers = #tpu.dot_dimension_numbers<[1], [0], [0], [1], [0, 0, 1, 1], [], []>} : vector<8x32xbf16>, vector<32x128xbf16>, vector<8x128xf32> -> vector<8x128xf32>
    %215 = arith.truncf %191 : vector<8x32xf32> to vector<8x32xbf16>
    %cst_63 = arith.constant dense<0.000000e+00> : vector<8x128xf32>
    %216 = tpu.matmul %215, %2, %cst_63 {dimension_numbers = #tpu.dot_dimension_numbers<[1], [0], [0], [1], [0, 0, 1, 1], [], []>} : vector<8x32xbf16>, vector<32x128xbf16>, vector<8x128xf32> -> vector<8x128xf32>
    %217 = arith.addf %214, %216 : vector<8x128xf32>
    %218 = arith.addf %217, %5 : vector<8x128xf32>
    %219 = vector.extract_strided_slice %218 {offsets = [0, 0], sizes = [8, 96], strides = [1, 1]} : vector<8x128xf32> to vector<8x96xf32>
    %220 = arith.negf %219 : vector<8x96xf32>
    %221 = math.exp %220 : vector<8x96xf32>
    %cst_64 = arith.constant 1.000000e+00 : f32
    %222 = vector.broadcast %cst_64 : f32 to vector<8x96xf32>
    %223 = arith.addf %222, %221 : vector<8x96xf32>
    %224 = arith.divf %222, %223 : vector<8x96xf32>
    %225 = vector.extract_strided_slice %218 {offsets = [0, 96], sizes = [8, 32], strides = [1, 1]} : vector<8x128xf32> to vector<8x32xf32>
    %226 = math.tanh %225 : vector<8x32xf32>
    %227 = vector.extract_strided_slice %224 {offsets = [0, 0], sizes = [8, 32], strides = [1, 1]} : vector<8x96xf32> to vector<8x32xf32>
    %228 = vector.extract_strided_slice %224 {offsets = [0, 32], sizes = [8, 32], strides = [1, 1]} : vector<8x96xf32> to vector<8x32xf32>
    %229 = vector.extract_strided_slice %224 {offsets = [0, 64], sizes = [8, 32], strides = [1, 1]} : vector<8x96xf32> to vector<8x32xf32>
    %230 = arith.mulf %228, %189 : vector<8x32xf32>
    %231 = arith.mulf %227, %226 : vector<8x32xf32>
    %232 = arith.addf %230, %231 : vector<8x32xf32>
    %233 = math.tanh %232 : vector<8x32xf32>
    %234 = arith.mulf %229, %233 : vector<8x32xf32>
    %c32_65 = arith.constant 32 : index
    %c0_66 = arith.constant 0 : index
    %235 = vector.load %arg15[%c32_65, %c0_66] : memref<64x32xf32, #tpu.memory_space<vmem>>, vector<8x32xf32>
    tpu.vector_store %arg15[%c32_65, %c0_66], %234 {strides = array<i32>} : memref<64x32xf32, #tpu.memory_space<vmem>>, vector<8x32xf32>,
    %c40 = arith.constant 40 : index
    %c0_67 = arith.constant 0 : index
    %236 = vector.load %arg14[%c40, %c0_67] : memref<64x128xf32, #tpu.memory_space<vmem>>, vector<8x128xf32>
    %237 = arith.truncf %212 : vector<8x32xf32> to vector<8x32xbf16>
    %cst_68 = arith.constant dense<0.000000e+00> : vector<8x128xf32>
    %238 = tpu.matmul %237, %0, %cst_68 {dimension_numbers = #tpu.dot_dimension_numbers<[1], [0], [0], [1], [0, 0, 1, 1], [], []>} : vector<8x32xbf16>, vector<32x128xbf16>, vector<8x128xf32> -> vector<8x128xf32>
    %239 = arith.addf %236, %238 : vector<8x128xf32>
    %240 = vector.extract_strided_slice %239 {offsets = [0, 0], sizes = [8, 96], strides = [1, 1]} : vector<8x128xf32> to vector<8x96xf32>
    %241 = arith.negf %240 : vector<8x96xf32>
    %242 = math.exp %241 : vector<8x96xf32>
    %cst_69 = arith.constant 1.000000e+00 : f32
    %243 = vector.broadcast %cst_69 : f32 to vector<8x96xf32>
    %244 = arith.addf %243, %242 : vector<8x96xf32>
    %245 = arith.divf %243, %244 : vector<8x96xf32>
    %246 = vector.extract_strided_slice %239 {offsets = [0, 96], sizes = [8, 32], strides = [1, 1]} : vector<8x128xf32> to vector<8x32xf32>
    %247 = math.tanh %246 : vector<8x32xf32>
    %248 = vector.extract_strided_slice %245 {offsets = [0, 0], sizes = [8, 32], strides = [1, 1]} : vector<8x96xf32> to vector<8x32xf32>
    %249 = vector.extract_strided_slice %245 {offsets = [0, 32], sizes = [8, 32], strides = [1, 1]} : vector<8x96xf32> to vector<8x32xf32>
    %250 = vector.extract_strided_slice %245 {offsets = [0, 64], sizes = [8, 32], strides = [1, 1]} : vector<8x96xf32> to vector<8x32xf32>
    %251 = arith.mulf %249, %210 : vector<8x32xf32>
    %252 = arith.mulf %248, %247 : vector<8x32xf32>
    %253 = arith.addf %251, %252 : vector<8x32xf32>
    %254 = math.tanh %253 : vector<8x32xf32>
    %255 = arith.mulf %250, %254 : vector<8x32xf32>
    %256 = arith.truncf %255 : vector<8x32xf32> to vector<8x32xbf16>
    %cst_70 = arith.constant dense<0.000000e+00> : vector<8x128xf32>
    %257 = tpu.matmul %256, %1, %cst_70 {dimension_numbers = #tpu.dot_dimension_numbers<[1], [0], [0], [1], [0, 0, 1, 1], [], []>} : vector<8x32xbf16>, vector<32x128xbf16>, vector<8x128xf32> -> vector<8x128xf32>
    %258 = arith.truncf %234 : vector<8x32xf32> to vector<8x32xbf16>
    %cst_71 = arith.constant dense<0.000000e+00> : vector<8x128xf32>
    %259 = tpu.matmul %258, %2, %cst_71 {dimension_numbers = #tpu.dot_dimension_numbers<[1], [0], [0], [1], [0, 0, 1, 1], [], []>} : vector<8x32xbf16>, vector<32x128xbf16>, vector<8x128xf32> -> vector<8x128xf32>
    %260 = arith.addf %257, %259 : vector<8x128xf32>
    %261 = arith.addf %260, %5 : vector<8x128xf32>
    %262 = vector.extract_strided_slice %261 {offsets = [0, 0], sizes = [8, 96], strides = [1, 1]} : vector<8x128xf32> to vector<8x96xf32>
    %263 = arith.negf %262 : vector<8x96xf32>
    %264 = math.exp %263 : vector<8x96xf32>
    %cst_72 = arith.constant 1.000000e+00 : f32
    %265 = vector.broadcast %cst_72 : f32 to vector<8x96xf32>
    %266 = arith.addf %265, %264 : vector<8x96xf32>
    %267 = arith.divf %265, %266 : vector<8x96xf32>
    %268 = vector.extract_strided_slice %261 {offsets = [0, 96], sizes = [8, 32], strides = [1, 1]} : vector<8x128xf32> to vector<8x32xf32>
    %269 = math.tanh %268 : vector<8x32xf32>
    %270 = vector.extract_strided_slice %267 {offsets = [0, 0], sizes = [8, 32], strides = [1, 1]} : vector<8x96xf32> to vector<8x32xf32>
    %271 = vector.extract_strided_slice %267 {offsets = [0, 32], sizes = [8, 32], strides = [1, 1]} : vector<8x96xf32> to vector<8x32xf32>
    %272 = vector.extract_strided_slice %267 {offsets = [0, 64], sizes = [8, 32], strides = [1, 1]} : vector<8x96xf32> to vector<8x32xf32>
    %273 = arith.mulf %271, %232 : vector<8x32xf32>
    %274 = arith.mulf %270, %269 : vector<8x32xf32>
    %275 = arith.addf %273, %274 : vector<8x32xf32>
    %276 = math.tanh %275 : vector<8x32xf32>
    %277 = arith.mulf %272, %276 : vector<8x32xf32>
    %c40_73 = arith.constant 40 : index
    %c0_74 = arith.constant 0 : index
    %278 = vector.load %arg15[%c40_73, %c0_74] : memref<64x32xf32, #tpu.memory_space<vmem>>, vector<8x32xf32>
    tpu.vector_store %arg15[%c40_73, %c0_74], %277 {strides = array<i32>} : memref<64x32xf32, #tpu.memory_space<vmem>>, vector<8x32xf32>,
    %c48 = arith.constant 48 : index
    %c0_75 = arith.constant 0 : index
    %279 = vector.load %arg14[%c48, %c0_75] : memref<64x128xf32, #tpu.memory_space<vmem>>, vector<8x128xf32>
    %280 = arith.truncf %255 : vector<8x32xf32> to vector<8x32xbf16>
    %cst_76 = arith.constant dense<0.000000e+00> : vector<8x128xf32>
    %281 = tpu.matmul %280, %0, %cst_76 {dimension_numbers = #tpu.dot_dimension_numbers<[1], [0], [0], [1], [0, 0, 1, 1], [], []>} : vector<8x32xbf16>, vector<32x128xbf16>, vector<8x128xf32> -> vector<8x128xf32>
    %282 = arith.addf %279, %281 : vector<8x128xf32>
    %283 = vector.extract_strided_slice %282 {offsets = [0, 0], sizes = [8, 96], strides = [1, 1]} : vector<8x128xf32> to vector<8x96xf32>
    %284 = arith.negf %283 : vector<8x96xf32>
    %285 = math.exp %284 : vector<8x96xf32>
    %cst_77 = arith.constant 1.000000e+00 : f32
    %286 = vector.broadcast %cst_77 : f32 to vector<8x96xf32>
    %287 = arith.addf %286, %285 : vector<8x96xf32>
    %288 = arith.divf %286, %287 : vector<8x96xf32>
    %289 = vector.extract_strided_slice %282 {offsets = [0, 96], sizes = [8, 32], strides = [1, 1]} : vector<8x128xf32> to vector<8x32xf32>
    %290 = math.tanh %289 : vector<8x32xf32>
    %291 = vector.extract_strided_slice %288 {offsets = [0, 0], sizes = [8, 32], strides = [1, 1]} : vector<8x96xf32> to vector<8x32xf32>
    %292 = vector.extract_strided_slice %288 {offsets = [0, 32], sizes = [8, 32], strides = [1, 1]} : vector<8x96xf32> to vector<8x32xf32>
    %293 = vector.extract_strided_slice %288 {offsets = [0, 64], sizes = [8, 32], strides = [1, 1]} : vector<8x96xf32> to vector<8x32xf32>
    %294 = arith.mulf %292, %253 : vector<8x32xf32>
    %295 = arith.mulf %291, %290 : vector<8x32xf32>
    %296 = arith.addf %294, %295 : vector<8x32xf32>
    %297 = math.tanh %296 : vector<8x32xf32>
    %298 = arith.mulf %293, %297 : vector<8x32xf32>
    %299 = arith.truncf %298 : vector<8x32xf32> to vector<8x32xbf16>
    %cst_78 = arith.constant dense<0.000000e+00> : vector<8x128xf32>
    %300 = tpu.matmul %299, %1, %cst_78 {dimension_numbers = #tpu.dot_dimension_numbers<[1], [0], [0], [1], [0, 0, 1, 1], [], []>} : vector<8x32xbf16>, vector<32x128xbf16>, vector<8x128xf32> -> vector<8x128xf32>
    %301 = arith.truncf %277 : vector<8x32xf32> to vector<8x32xbf16>
    %cst_79 = arith.constant dense<0.000000e+00> : vector<8x128xf32>
    %302 = tpu.matmul %301, %2, %cst_79 {dimension_numbers = #tpu.dot_dimension_numbers<[1], [0], [0], [1], [0, 0, 1, 1], [], []>} : vector<8x32xbf16>, vector<32x128xbf16>, vector<8x128xf32> -> vector<8x128xf32>
    %303 = arith.addf %300, %302 : vector<8x128xf32>
    %304 = arith.addf %303, %5 : vector<8x128xf32>
    %305 = vector.extract_strided_slice %304 {offsets = [0, 0], sizes = [8, 96], strides = [1, 1]} : vector<8x128xf32> to vector<8x96xf32>
    %306 = arith.negf %305 : vector<8x96xf32>
    %307 = math.exp %306 : vector<8x96xf32>
    %cst_80 = arith.constant 1.000000e+00 : f32
    %308 = vector.broadcast %cst_80 : f32 to vector<8x96xf32>
    %309 = arith.addf %308, %307 : vector<8x96xf32>
    %310 = arith.divf %308, %309 : vector<8x96xf32>
    %311 = vector.extract_strided_slice %304 {offsets = [0, 96], sizes = [8, 32], strides = [1, 1]} : vector<8x128xf32> to vector<8x32xf32>
    %312 = math.tanh %311 : vector<8x32xf32>
    %313 = vector.extract_strided_slice %310 {offsets = [0, 0], sizes = [8, 32], strides = [1, 1]} : vector<8x96xf32> to vector<8x32xf32>
    %314 = vector.extract_strided_slice %310 {offsets = [0, 32], sizes = [8, 32], strides = [1, 1]} : vector<8x96xf32> to vector<8x32xf32>
    %315 = vector.extract_strided_slice %310 {offsets = [0, 64], sizes = [8, 32], strides = [1, 1]} : vector<8x96xf32> to vector<8x32xf32>
    %316 = arith.mulf %314, %275 : vector<8x32xf32>
    %317 = arith.mulf %313, %312 : vector<8x32xf32>
    %318 = arith.addf %316, %317 : vector<8x32xf32>
    %319 = math.tanh %318 : vector<8x32xf32>
    %320 = arith.mulf %315, %319 : vector<8x32xf32>
    %c48_81 = arith.constant 48 : index
    %c0_82 = arith.constant 0 : index
    %321 = vector.load %arg15[%c48_81, %c0_82] : memref<64x32xf32, #tpu.memory_space<vmem>>, vector<8x32xf32>
    tpu.vector_store %arg15[%c48_81, %c0_82], %320 {strides = array<i32>} : memref<64x32xf32, #tpu.memory_space<vmem>>, vector<8x32xf32>,
    %c56 = arith.constant 56 : index
    %c0_83 = arith.constant 0 : index
    %322 = vector.load %arg14[%c56, %c0_83] : memref<64x128xf32, #tpu.memory_space<vmem>>, vector<8x128xf32>
    %323 = arith.truncf %298 : vector<8x32xf32> to vector<8x32xbf16>
    %cst_84 = arith.constant dense<0.000000e+00> : vector<8x128xf32>
    %324 = tpu.matmul %323, %0, %cst_84 {dimension_numbers = #tpu.dot_dimension_numbers<[1], [0], [0], [1], [0, 0, 1, 1], [], []>} : vector<8x32xbf16>, vector<32x128xbf16>, vector<8x128xf32> -> vector<8x128xf32>
    %325 = arith.addf %322, %324 : vector<8x128xf32>
    %326 = vector.extract_strided_slice %325 {offsets = [0, 0], sizes = [8, 96], strides = [1, 1]} : vector<8x128xf32> to vector<8x96xf32>
    %327 = arith.negf %326 : vector<8x96xf32>
    %328 = math.exp %327 : vector<8x96xf32>
    %cst_85 = arith.constant 1.000000e+00 : f32
    %329 = vector.broadcast %cst_85 : f32 to vector<8x96xf32>
    %330 = arith.addf %329, %328 : vector<8x96xf32>
    %331 = arith.divf %329, %330 : vector<8x96xf32>
    %332 = vector.extract_strided_slice %325 {offsets = [0, 96], sizes = [8, 32], strides = [1, 1]} : vector<8x128xf32> to vector<8x32xf32>
    %333 = math.tanh %332 : vector<8x32xf32>
    %334 = vector.extract_strided_slice %331 {offsets = [0, 0], sizes = [8, 32], strides = [1, 1]} : vector<8x96xf32> to vector<8x32xf32>
    %335 = vector.extract_strided_slice %331 {offsets = [0, 32], sizes = [8, 32], strides = [1, 1]} : vector<8x96xf32> to vector<8x32xf32>
    %336 = vector.extract_strided_slice %331 {offsets = [0, 64], sizes = [8, 32], strides = [1, 1]} : vector<8x96xf32> to vector<8x32xf32>
    %337 = arith.mulf %335, %296 : vector<8x32xf32>
    %338 = arith.mulf %334, %333 : vector<8x32xf32>
    %339 = arith.addf %337, %338 : vector<8x32xf32>
    %340 = math.tanh %339 : vector<8x32xf32>
    %341 = arith.mulf %336, %340 : vector<8x32xf32>
    %342 = arith.truncf %341 : vector<8x32xf32> to vector<8x32xbf16>
    %cst_86 = arith.constant dense<0.000000e+00> : vector<8x128xf32>
    %343 = tpu.matmul %342, %1, %cst_86 {dimension_numbers = #tpu.dot_dimension_numbers<[1], [0], [0], [1], [0, 0, 1, 1], [], []>} : vector<8x32xbf16>, vector<32x128xbf16>, vector<8x128xf32> -> vector<8x128xf32>
    %344 = arith.truncf %320 : vector<8x32xf32> to vector<8x32xbf16>
    %cst_87 = arith.constant dense<0.000000e+00> : vector<8x128xf32>
    %345 = tpu.matmul %344, %2, %cst_87 {dimension_numbers = #tpu.dot_dimension_numbers<[1], [0], [0], [1], [0, 0, 1, 1], [], []>} : vector<8x32xbf16>, vector<32x128xbf16>, vector<8x128xf32> -> vector<8x128xf32>
    %346 = arith.addf %343, %345 : vector<8x128xf32>
    %347 = arith.addf %346, %5 : vector<8x128xf32>
    %348 = vector.extract_strided_slice %347 {offsets = [0, 0], sizes = [8, 96], strides = [1, 1]} : vector<8x128xf32> to vector<8x96xf32>
    %349 = arith.negf %348 : vector<8x96xf32>
    %350 = math.exp %349 : vector<8x96xf32>
    %cst_88 = arith.constant 1.000000e+00 : f32
    %351 = vector.broadcast %cst_88 : f32 to vector<8x96xf32>
    %352 = arith.addf %351, %350 : vector<8x96xf32>
    %353 = arith.divf %351, %352 : vector<8x96xf32>
    %354 = vector.extract_strided_slice %347 {offsets = [0, 96], sizes = [8, 32], strides = [1, 1]} : vector<8x128xf32> to vector<8x32xf32>
    %355 = math.tanh %354 : vector<8x32xf32>
    %356 = vector.extract_strided_slice %353 {offsets = [0, 0], sizes = [8, 32], strides = [1, 1]} : vector<8x96xf32> to vector<8x32xf32>
    %357 = vector.extract_strided_slice %353 {offsets = [0, 32], sizes = [8, 32], strides = [1, 1]} : vector<8x96xf32> to vector<8x32xf32>
    %358 = vector.extract_strided_slice %353 {offsets = [0, 64], sizes = [8, 32], strides = [1, 1]} : vector<8x96xf32> to vector<8x32xf32>
    %359 = arith.mulf %357, %318 : vector<8x32xf32>
    %360 = arith.mulf %356, %355 : vector<8x32xf32>
    %361 = arith.addf %359, %360 : vector<8x32xf32>
    %362 = math.tanh %361 : vector<8x32xf32>
    %363 = arith.mulf %358, %362 : vector<8x32xf32>
    %c56_89 = arith.constant 56 : index
    %c0_90 = arith.constant 0 : index
    %364 = vector.load %arg15[%c56_89, %c0_90] : memref<64x32xf32, #tpu.memory_space<vmem>>, vector<8x32xf32>
    tpu.vector_store %arg15[%c56_89, %c0_90], %363 {strides = array<i32>} : memref<64x32xf32, #tpu.memory_space<vmem>>, vector<8x32xf32>,
    %c0_91 = arith.constant 0 : index
    %c0_92 = arith.constant 0 : index
    %365 = vector.load %arg15[%c0_91, %c0_92] : memref<64x32xf32, #tpu.memory_space<vmem>>, vector<64x32xf32>
    %366 = arith.truncf %365 : vector<64x32xf32> to vector<64x32xbf16>
    %c0_93 = arith.constant 0 : index
    %c0_94 = arith.constant 0 : index
    %367 = vector.load %arg9[%c0_93, %c0_94] : memref<32x128xbf16, #tpu.memory_space<vmem>>, vector<32x128xbf16>
    %cst_95 = arith.constant dense<0.000000e+00> : vector<64x128xf32>
    %368 = tpu.matmul %366, %367, %cst_95 {dimension_numbers = #tpu.dot_dimension_numbers<[1], [0], [0], [1], [0, 0, 1, 1], [], []>} : vector<64x32xbf16>, vector<32x128xbf16>, vector<64x128xf32> -> vector<64x128xf32>
    %c0_96 = arith.constant 0 : index
    %c0_97 = arith.constant 0 : index
    %369 = vector.load %arg10[%c0_96, %c0_97] : memref<1x128xf32, #tpu.memory_space<vmem>>, vector<1x128xf32>
    %370 = vector.broadcast %369 : vector<1x128xf32> to vector<64x128xf32>
    %371 = arith.addf %368, %370 : vector<64x128xf32>
    %c0_98 = arith.constant 0 : index
    %c0_99 = arith.constant 0 : index
    %372 = vector.load %arg11[%c0_98, %c0_99] : memref<64x128xf32, #tpu.memory_space<vmem>>, vector<64x128xf32>
    tpu.vector_store %arg11[%c0_98, %c0_99], %371 {strides = array<i32>} : memref<64x128xf32, #tpu.memory_space<vmem>>, vector<64x128xf32>,
    %c0_100 = arith.constant 0 : index
    %c0_101 = arith.constant 0 : index
    %c0_102 = arith.constant 0 : index
    %373 = vector.load %arg12[%c0_100, %c0_101, %c0_102] : memref<2x8x32xf32, #tpu.memory_space<vmem>>, vector<1x8x32xf32>
    %374 = vector.shape_cast %373 : vector<1x8x32xf32> to vector<8x32xf32>
    %375 = vector.shape_cast %341 : vector<8x32xf32> to vector<1x8x32xf32>
    tpu.vector_store %arg12[%c0_100, %c0_101, %c0_102], %375 {strides = array<i32>} : memref<2x8x32xf32, #tpu.memory_space<vmem>>, vector<1x8x32xf32>,
    %c0_103 = arith.constant 0 : index
    %c0_104 = arith.constant 0 : index
    %c0_105 = arith.constant 0 : index
    %376 = vector.load %arg13[%c0_103, %c0_104, %c0_105] : memref<2x8x32xf32, #tpu.memory_space<vmem>>, vector<1x8x32xf32>
    %377 = vector.shape_cast %376 : vector<1x8x32xf32> to vector<8x32xf32>
    %378 = vector.shape_cast %339 : vector<8x32xf32> to vector<1x8x32xf32>
    tpu.vector_store %arg13[%c0_103, %c0_104, %c0_105], %378 {strides = array<i32>} : memref<2x8x32xf32, #tpu.memory_space<vmem>>, vector<1x8x32xf32>,
    %c1_106 = arith.constant 1 : index
    %c0_107 = arith.constant 0 : index
    %c0_108 = arith.constant 0 : index
    %379 = vector.load %arg12[%c1_106, %c0_107, %c0_108] : memref<2x8x32xf32, #tpu.memory_space<vmem>>, vector<1x8x32xf32>
    %380 = vector.shape_cast %379 : vector<1x8x32xf32> to vector<8x32xf32>
    %381 = vector.shape_cast %363 : vector<8x32xf32> to vector<1x8x32xf32>
    tpu.vector_store %arg12[%c1_106, %c0_107, %c0_108], %381 {strides = array<i32>} : memref<2x8x32xf32, #tpu.memory_space<vmem>>, vector<1x8x32xf32>,
    %c1_109 = arith.constant 1 : index
    %c0_110 = arith.constant 0 : index
    %c0_111 = arith.constant 0 : index
    %382 = vector.load %arg13[%c1_109, %c0_110, %c0_111] : memref<2x8x32xf32, #tpu.memory_space<vmem>>, vector<1x8x32xf32>
    %383 = vector.shape_cast %382 : vector<1x8x32xf32> to vector<8x32xf32>
    %384 = vector.shape_cast %361 : vector<8x32xf32> to vector<1x8x32xf32>
    tpu.vector_store %arg13[%c1_109, %c0_110, %c0_111], %384 {strides = array<i32>} : memref<2x8x32xf32, #tpu.memory_space<vmem>>, vector<1x8x32xf32>,
    return
  }
}

</mosaic_0001>

<bundles_post_ra>
// kernel: decoder_forward.1
= control target key start
LH: loop header
LB: loop body
LE: loop exit
PB: predicated region body
PF: predicated region fallthrough
CT: control target
= control target key end

     0   :  { %vm104_vm0 = vcmask 130048   ;;  %v2430_v4 = vmov 0.0   ;;  %vm2431_vm1 = vmmov 0   ;;  %vm210_vm2 = vcmask 261120   ;;  %s3004_s3 = inlined_call_operand.vmem [shape: bf16[16,128], index: 3, kind: input, shape index: {}]   ;;  %s3005_s0 = inlined_call_operand.vmem [shape: bf16[64,16], index: 0, kind: input, shape index: {}]   ;;  %s3006_s4 = inlined_call_operand.vmem [shape: bf16[32,128], index: 4, kind: input, shape index: {}]   ;;  %s3007_s1 = inlined_call_operand.vmem [shape: f32[2,8,32], index: 1, kind: input, shape index: {}, may-alias: {1,12}]   ;;  %s3008_s5 = inlined_call_operand.vmem [shape: f32[1,128], index: 5, kind: input, shape index: {}]   ;;  %s3009_s2 = inlined_call_operand.vmem [shape: f32[2,8,32], index: 2, kind: input, shape index: {}, may-alias: {2,13}]   ;;  %s3010_s7 = inlined_call_operand.vmem [shape: bf16[32,128], index: 7, kind: input, shape index: {}]   ;;  %s3011_s6 = inlined_call_operand.vmem [shape: bf16[32,128], index: 6, kind: input, shape index: {}]   ;;  %s3012_s8 = inlined_call_operand.vmem [shape: f32[1,128], index: 8, kind: input, shape index: {}]   ;;  %s3013_s9 = inlined_call_operand.vmem [shape: bf16[32,128], index: 9, kind: input, shape index: {}]   ;;  %s3014_s12 = inlined_call_operand.vmem [shape: f32[2,8,32], index: 12, kind: output, shape index: {1}, may-alias: {1,12}]   ;;  %s3015_s13 = inlined_call_operand.vmem [shape: f32[2,8,32], index: 13, kind: output, shape index: {2}, may-alias: {2,13}]   ;;  %s3016_s10 = inlined_call_operand.vmem [shape: f32[1,128], index: 10, kind: input, shape index: {}]   ;;  %s3017_s11 = inlined_call_operand.vmem [shape: f32[64,128], index: 11, kind: output, shape index: {0}]  }
   0x1   :  { %v2284_v0 = vld [vmem:[%s3004_s3] sm:$0xff]   ;;  %v2285_v1 = vld [vmem:[%s3005_s0 + $0x10] sm:$0xff]   ;;  %v2286_v2 = vld [vmem:[%s3005_s0 + $0x18] sm:$0xff]  }
   0x2   :  { %2277 = vmatprep.subr.bf16.mxu1 %v2284_v0  ;;  %2063 = vmatprep.subr.bf16.mxu0 %v2284_v0  ;;  %v2518_v3 = vld [vmem:[%s3006_s4] sm:$0xff]   ;;  %v2289_v6 = vld [vmem:[%s3005_s0 + $0x8] sm:$0xff]  }
   0x3   :  { %2278 = vmatpush3.bf16.msra.mxu1 %v2284_v0  ;;  %2069 = vmatprep.mubr.msk.bf16.mxu1 %vm104_vm0, %v2285_v1  ;;  %v2288_v5 = vld [vmem:[%s3005_s0] sm:$0xff]   ;;  %v2535_v7 = vld [vmem:[%s3006_s4 + $0x8] sm:$0xff]  }
   0x4   :  { %2064 = vmatpush3.bf16.msra.mxu0 %v2284_v0  ;;  %2073 = vmatprep.subr.bf16.mxu1 %v2430_v4  ;;  %v190_v8 = vld [vmem:[%s3007_s1] sm:$0xff]  ;;  %v1923_v45 = vld [vmem:[%s3007_s1 + $0x8] sm:$0xff]  ;;  %s2433_s1 = smov 64  }
   0x5   :  { %2089 = vmatprep.subr.bf16.mxu0 %v2430_v4  ;;  %2065 = vmatprep.mubr.msk.bf16.mxu0 %vm104_vm0, %v2288_v5  ;;  %v197_v9 = vpack.c.bf16 %v190_v8, %v190_v8  ;;  %v1913_v10 = vld [vmem:[%s3008_s5] ss:$0 sm:$0xff]  ;;  %s2432_s5 = smov 32   ;;  %v2587_v46 = vld [vmem:[%s3010_s7 + $0x8] sm:$0xff]   ;;  %v284_v49 = vpack.c.bf16 %v1923_v45, %v1923_v45 }
   0x6   :  { %2070 = vmatmul.mubr.msk.bf16.vlgmr.msra.gmra.mrb[0].mxu1 %vm104_vm0, %v2286_v2  ;;  %v193_v33 = vld [vmem:[%s3009_s2] sm:$0xff]  ;;  %v2600_v48 = vld [vmem:[%s3011_s6 + $0x8] sm:$0xff]  }
   0x7   :  { %2074 = vmatpush3.bf16.msra.mxu1 %v2518_v3  ;;  %2066 = vmatmul.mubr.msk.bf16.vlgmr.msra.gmra.mrb[0].mxu0 %vm104_vm0, %v2289_v6  ;;  %v2579_v44 = vld [vmem:[%s3010_s7] sm:$0xff]  }
   0x8   :  { %2075 = vmatprep.subr.bf16.mxu1 %v2430_v4  ;;  %2077 = vmatprep.mubr.msk.bf16.mxu1 %vm2431_vm1, %v2430_v4  ;;  %v2593_v47 = vld [vmem:[%s3011_s6] sm:$0xff]  }
   0x9   :  { %2093 = vmatprep.mubr.msk.bf16.mxu0 %vm2431_vm1, %v2430_v4  ;;  %2090 = vmatpush3.bf16.msra.mxu0 %v2593_v47  ;;  %v2633_v59 = vld [vmem:[%s3012_s8] ss:$0 sm:$0xff] }
   0xa   :  { %2091 = vmatprep.subr.bf16.mxu0 %v2430_v4 }
   0xb   :  { %2076 = vmatpush3.bf16.msra.mxu1 %v2535_v7 }
   0xc   :  { %2081 = vmatprep.subr.bf16.mxu1 %v2430_v4 }
   0xd   :  { %2092 = vmatpush3.bf16.msra.mxu0 %v2600_v48 }
   0xe   :  { %2078 = vmatmul.mubr.msk.bf16.vlgmr.msra.gmra.mrb[4].mxu1 %vm210_vm2, %v197_v9  ;;  %2105 = vmatprep.subr.bf16.mxu0 %v2430_v4 }
   0xf   :  { %2085 = vmatprep.mubr.msk.bf16.mxu1 %vm2431_vm1, %v2430_v4  ;;  %2082 = vmatpush3.bf16.msra.mxu1 %v2579_v44 }
  0x10   :  { %2083 = vmatprep.subr.bf16.mxu1 %v2430_v4 }
  0x13   :  { %2084 = vmatpush3.bf16.msra.mxu1 %v2587_v46 }
  0x14   :  { %2097 = vmatprep.subr.bf16.mxu1 %v2430_v4 }
  0x16   :  { %2086 = vmatmul.mubr.msk.bf16.vlgmr.msra.gmra.mrb[8].mxu1 %vm210_vm2, %v284_v49 }
  0x17   :  { %2098 = vmatpush3.bf16.msra.mxu1 %v2518_v3  ;;  %2101 = vmatprep.mubr.msk.bf16.mxu1 %vm2431_vm1, %v2430_v4 }
  0x18   :  { %2099 = vmatprep.subr.bf16.mxu1 %v2430_v4 }
  0x1b   :  { %2100 = vmatpush3.bf16.msra.mxu1 %v2535_v7 }
  0x1c   :  { %2113 = vmatprep.subr.bf16.mxu1 %v2430_v4 }
  0xd9   :  { %v2071_v11 = vpop.f32.mrb[0].mxu1 }
  0xda   :  { %v2553_v12 = vadd.f32 %v2071_v11, %v1913_v10  ;;  %v167_v13 = vpop.f32.mrb[1].mxu1  ;;  %v2067_v14 = vpop.f32.mrb[0].mxu0 }
  0xdb   :  { %v2555_v15 = vadd.f32 %v1913_v10, %v167_v13  ;;  %v2072_v16 = vpop.f32.mrb[2].mxu1  ;;  %v2557_v17 = vadd.f32 %v2067_v14, %v1913_v10  ;;  %v151_v18 = vpop.f32.mrb[1].mxu0  ;;  %v1924_v13 = vld [vmem:[%s3009_s2 + $0x8] sm:$0xff] }
  0xdc   :  { %v2559_v19 = vadd.f32 %v2072_v16, %v1913_v10  ;;  %v170_v20 = vpop.f32.mrb[3].mxu1  ;;  %v2068_v21 = vpop.f32.mrb[2].mxu0  ;;  %v152_v25 = vadd.f32 %v1913_v10, %v151_v18 }
  0xdd   :  { %v2561_v22 = vadd.f32 %v1913_v10, %v170_v20  ;;  %v2563_v23 = vadd.f32 %v2068_v21, %v1913_v10  ;;  %v154_v24 = vpop.f32.mrb[3].mxu0 }
  0xde   :  { %v2565_v26 = vadd.f32 %v1913_v10, %v154_v24 }
  0xe1   :  { %v248_v27 = vpop.f32.mrb[4].mxu1 }
  0xe2   :  { %v254_v28 = vadd.f32 %v248_v27, %v152_v25  ;;  %v2079_v29 = vpop.f32.mrb[5].mxu1 }
  0xe3   :  { %v251_v30 = vpop.f32.mrb[6].mxu1 }
  0xe4   :  { %2297 = vtanh.f32 %v254_v28  ;;  %v2080_v31 = vpop.f32.mrb[7].mxu1  ;;  %v1928_v34 = vmul.f32 -1.442695, %v254_v28 }
  0xe6   :  { %2299 = vpow2.f32 %v1928_v34 }
  0xe9   :  { %v334_v54 = vpop.f32.mrb[8].mxu1 }
  0xea   :  { %v2087_v55 = vpop.f32.mrb[9].mxu1 }
  0xeb   :  { %v337_v56 = vpop.f32.mrb[10].mxu1 }
  0xec   :  { %v2088_v57 = vpop.f32.mrb[11].mxu1 }
  0xee   :  { %v2298_v32 = vpop.eup %2297 }
  0xef   :  { %268 = vrot.lane.b32.xlu0 %v2298_v32, %s2432_s5 }
  0xf0   :  { %v2300_v35 = vpop.eup %2299 }
  0xf1   :  { %v258_v36 = vadd.f32 1.0, %v2300_v35 }
  0xf3   :  { %263 = vrot.lane.b32.xlu0 %v193_v33, %s2432_s5  ;;  %2301 = vrcp.f32 %v258_v36 }
  0xfd   :  { %v2302_v37 = vpop.eup %2301 }
 0x161   :  { %v269_v38 = vpop.permute.xlu0 %268 }
 0x162   :  { %v271_v39 = vmul.f32 %v2302_v37, %v269_v38 }
 0x164   :  { %273 = vrot.lane.b32.xlu1 %v271_v39, %s2432_s5 }
 0x165   :  { %v264_v40 = vpop.permute.xlu0 %263 }
 0x166   :  { %v266_v41 = vmul.f32 %v2302_v37, %v264_v40 }
 0x1d6   :  { %v274_v42 = vpop.permute.xlu1 %273 }
 0x1d7   :  { %v2573_v43 = vadd.f32 %v274_v42, %v266_v41 }
 0x1d9   :  { %2303 = vtanh.f32 %v2573_v43 }
 0x1e3   :  { %v2304_v50 = vpop.eup %2303 }
 0x1e4   :  { %279 = vrot.lane.b32.xlu1 %v2304_v50, %s2432_s5 }
 0x256   :  { %v280_v51 = vpop.permute.xlu1 %279 }
 0x257   :  { %v282_v52 = vmul.f32 %v2302_v37, %v280_v51 }
 0x259   :  { %v283_v53 = vpack.c.bf16 %v282_v52, %v282_v52 }
 0x25b   :  { %341 = vrot.lane.b32.xlu0 %v283_v53, %s2433_s1 }
 0x2cd   :  { %v342_v58 = vpop.permute.xlu0 %341 }
 0x2ce   :  { %2094 = vmatmul.mubr.msk.bf16.vlgmr.msra.gmra.mrb[4].mxu0 %vm210_vm2, %v342_v58  ;;  %2102 = vmatmul.mubr.msk.bf16.vlgmr.msra.gmra.mrb[12].mxu1 %vm210_vm2, %v342_v58 }
 0x2cf   :  { %2114 = vmatpush3.bf16.msra.mxu1 %v2593_v47  ;;  %2106 = vmatpush3.bf16.msra.mxu0 %v2579_v44 }
 0x2d0   :  { %2115 = vmatprep.subr.bf16.mxu1 %v2430_v4  ;;  %2107 = vmatprep.subr.bf16.mxu0 %v2430_v4 }
 0x2d1   :  { %2117 = vmatprep.mubr.msk.bf16.mxu1 %vm2431_vm1, %v2430_v4  ;;  %2109 = vmatprep.mubr.msk.bf16.mxu0 %vm2431_vm1, %v2430_v4 }
 0x2d3   :  { %2116 = vmatpush3.bf16.msra.mxu1 %v2600_v48  ;;  %2108 = vmatpush3.bf16.msra.mxu0 %v2587_v46 }
 0x2d4   :  { %2121 = vmatprep.subr.bf16.mxu0 %v2430_v4  ;;  %2129 = vmatprep.subr.bf16.mxu1 %v2430_v4 }
 0x3a1   :  { %v392_v60 = vpop.f32.mrb[4].mxu0  ;;  %v467_v61 = vpop.f32.mrb[12].mxu1 }
 0x3a2   :  { %v393_v62 = vadd.f32 %v392_v60, %v334_v54  ;;  %v473_v63 = vadd.f32 %v467_v61, %v2565_v26  ;;  %v2095_v0 = vpop.f32.mrb[5].mxu0  ;;  %v2103_v1 = vpop.f32.mrb[13].mxu1 }
 0x3a3   :  { %v395_v2 = vpop.f32.mrb[6].mxu0  ;;  %v470_v5 = vpop.f32.mrb[14].mxu1 }
 0x3a4   :  { %v398_v6 = vadd.f32 %v2633_v59, %v393_v62  ;;  %2305 = vtanh.f32 %v473_v63  ;;  %v2096_v8 = vpop.f32.mrb[7].mxu0  ;;  %v2104_v9 = vpop.f32.mrb[15].mxu1  ;;  %v1937_v14 = vmul.f32 -1.442695, %v473_v63 }
 0x3a6   :  { %2307 = vtanh.f32 %v398_v6  ;;  %v1935_v16 = vmul.f32 -1.442695, %v398_v6 }
 0x3a7   :  { %2309 = vpow2.f32 %v1937_v14 }
 0x3a8   :  { %2311 = vpow2.f32 %v1935_v16 }
 0x3ae   :  { %v2306_v10 = vpop.eup %2305 }
 0x3af   :  { %483 = vrot.lane.b32.xlu0 %v2306_v10, %s2432_s5 }
 0x3b0   :  { %v2308_v11 = vpop.eup %2307 }
 0x3b1   :  { %412 = vrot.lane.b32.xlu1 %v2308_v11, %s2432_s5  ;;  %v2310_v18 = vpop.eup %2309 }
 0x3b2   :  { %v2312_v20 = vpop.eup %2311  ;;  %v477_v21 = vadd.f32 1.0, %v2310_v18 }
 0x3b3   :  { %v402_v24 = vadd.f32 1.0, %v2312_v20 }
 0x3b4   :  { %2313 = vrcp.f32 %v477_v21 }
 0x3b5   :  { %407 = vrot.lane.b32.xlu1 %v1924_v13, %s2432_s5  ;;  %2315 = vrcp.f32 %v402_v24 }
 0x3be   :  { %v2314_v25 = vpop.eup %2313 }
 0x3bf   :  { %v2316_v28 = vpop.eup %2315  ;;  %v481_v32 = vmul.f32 %v2314_v25, %v2573_v43 }
 0x421   :  { %v484_v26 = vpop.permute.xlu0 %483 }
 0x422   :  { %v486_v27 = vmul.f32 %v2314_v25, %v484_v26 }
 0x423   :  { %v413_v29 = vpop.permute.xlu1 %412 }
 0x424   :  { %v415_v30 = vmul.f32 %v2316_v28, %v413_v29  ;;  %488 = vrot.lane.b32.xlu1 %v486_v27, %s2432_s5 }
 0x426   :  { %417 = vrot.lane.b32.xlu0 %v415_v30, %s2432_s5 }
 0x427   :  { %v408_v31 = vpop.permute.xlu1 %407 }
 0x428   :  { %v410_v34 = vmul.f32 %v2316_v28, %v408_v31 }
 0x496   :  { %v489_v33 = vpop.permute.xlu1 %488 }
 0x497   :  { %v2646_v35 = vadd.f32 %v489_v33, %v481_v32 }
 0x498   :  { %v418_v36 = vpop.permute.xlu0 %417 }
 0x499   :  { %2317 = vtanh.f32 %v2646_v35  ;;  %v2649_v37 = vadd.f32 %v418_v36, %v410_v34 }
 0x49b   :  { %2319 = vtanh.f32 %v2649_v37 }
 0x4a3   :  { %v2318_v38 = vpop.eup %2317 }
 0x4a4   :  { %494 = vrot.lane.b32.xlu1 %v2318_v38, %s2432_s5 }
 0x4a5   :  { %v2320_v39 = vpop.eup %2319 }
 0x4a6   :  { %423 = vrot.lane.b32.xlu0 %v2320_v39, %s2432_s5 }
 0x516   :  { %v495_v40 = vpop.permute.xlu1 %494 }
 0x517   :  { %v497_v41 = vmul.f32 %v2314_v25, %v495_v40 }
 0x518   :  { %v424_v42 = vpop.permute.xlu0 %423 }
 0x519   :  { %v498_v43 = vpack.c.bf16 %v497_v41, %v497_v41  ;;  %v2654_v45 = vmul.f32 %v2316_v28, %v424_v42 }
 0x51b   :  { %v499_v49 = vpack.c.bf16 %v2654_v45, %v2654_v45  ;;  %547 = vrot.lane.b32.xlu1 %v498_v43, %s2433_s1 }
 0x51d   :  { %501 = vrot.lane.b32.xlu0 %v499_v49, %s2433_s1 }
 0x58d   :  { %v548_v50 = vpop.permute.xlu1 %547 }
 0x58e   :  { %2118 = vmatmul.mubr.msk.bf16.vlgmr.msra.gmra.mrb[16].mxu1 %vm210_vm2, %v548_v50 }
 0x58f   :  { %v502_v51 = vpop.permute.xlu0 %501  ;;  %2130 = vmatpush3.bf16.msra.mxu1 %v2579_v44  ;;  %2133 = vmatprep.mubr.msk.bf16.mxu1 %vm2431_vm1, %v2430_v4 }
 0x590   :  { %2110 = vmatmul.mubr.msk.bf16.vlgmr.msra.gmra.mrb[8].mxu0 %vm210_vm2, %v502_v51  ;;  %2131 = vmatprep.subr.bf16.mxu1 %v2430_v4 }
 0x591   :  { %2122 = vmatpush3.bf16.msra.mxu0 %v2518_v3  ;;  %2125 = vmatprep.mubr.msk.bf16.mxu0 %vm2431_vm1, %v2430_v4 }
 0x592   :  { %2123 = vmatprep.subr.bf16.mxu0 %v2430_v4 }
 0x593   :  { %2132 = vmatpush3.bf16.msra.mxu1 %v2587_v46 }
 0x594   :  { %2145 = vmatprep.subr.bf16.mxu1 %v2430_v4 }
 0x595   :  { %2124 = vmatpush3.bf16.msra.mxu0 %v2535_v7 }
 0x596   :  { %2137 = vmatprep.subr.bf16.mxu0 %v2430_v4 }
 0x598   :  { %2126 = vmatmul.mubr.msk.bf16.vlgmr.msra.gmra.mrb[12].mxu0 %vm210_vm2, %v548_v50 }
 0x599   :  { %2138 = vmatpush3.bf16.msra.mxu0 %v2593_v47  ;;  %2141 = vmatprep.mubr.msk.bf16.mxu0 %vm2431_vm1, %v2430_v4 }
 0x59a   :  { %2139 = vmatprep.subr.bf16.mxu0 %v2430_v4 }
 0x59d   :  { %2140 = vmatpush3.bf16.msra.mxu0 %v2600_v48 }
 0x59e   :  { %2153 = vmatprep.subr.bf16.mxu0 %v2430_v4 }
 0x661   :  { %v586_v52 = vpop.f32.mrb[16].mxu1 }
 0x662   :  { %v2119_v53 = vpop.f32.mrb[17].mxu1 }
 0x663   :  { %v540_v54 = vpop.f32.mrb[8].mxu0  ;;  %v589_v55 = vpop.f32.mrb[18].mxu1 }
 0x664   :  { %v587_v56 = vadd.f32 %v586_v52, %v540_v54  ;;  %v2111_v57 = vpop.f32.mrb[9].mxu0  ;;  %v2120_v58 = vpop.f32.mrb[19].mxu1 }
 0x665   :  { %v543_v60 = vpop.f32.mrb[10].mxu0 }
 0x666   :  { %v592_v61 = vadd.f32 %v2633_v59, %v587_v56  ;;  %v2112_v62 = vpop.f32.mrb[11].mxu0 }
 0x668   :  { %2321 = vtanh.f32 %v592_v61  ;;  %v1940_v9 = vmul.f32 -1.442695, %v592_v61 }
 0x66b   :  { %v657_v63 = vpop.f32.mrb[12].mxu0 }
 0x66c   :  { %v663_v0 = vadd.f32 %v657_v63, %v2557_v17  ;;  %v2127_v1 = vpop.f32.mrb[13].mxu0 }
 0x66d   :  { %v660_v2 = vpop.f32.mrb[14].mxu0 }
 0x66e   :  { %2323 = vtanh.f32 %v663_v0  ;;  %v2128_v5 = vpop.f32.mrb[15].mxu0  ;;  %v1942_v10 = vmul.f32 -1.442695, %v663_v0 }
 0x66f   :  { %2325 = vpow2.f32 %v1940_v9 }
 0x670   :  { %2327 = vpow2.f32 %v1942_v10 }
 0x672   :  { %v2322_v6 = vpop.eup %2321 }
 0x673   :  { %602 = vrot.lane.b32.xlu0 %v2322_v6, %s2432_s5 }
 0x678   :  { %v2324_v8 = vpop.eup %2323 }
 0x679   :  { %673 = vrot.lane.b32.xlu1 %v2324_v8, %s2432_s5  ;;  %v2326_v11 = vpop.eup %2325 }
 0x67a   :  { %v596_v13 = vadd.f32 1.0, %v2326_v11  ;;  %v2328_v14 = vpop.eup %2327 }
 0x67b   :  { %v667_v16 = vadd.f32 1.0, %v2328_v14 }
 0x67c   :  { %2329 = vrcp.f32 %v596_v13 }
 0x67d   :  { %2331 = vrcp.f32 %v667_v16 }
 0x686   :  { %v2330_v17 = vpop.eup %2329 }
 0x687   :  { %v2332_v21 = vpop.eup %2331  ;;  %v600_v26 = vmul.f32 %v2330_v17, %v2649_v37 }
 0x688   :  { %v671_v29 = vmul.f32 %v2332_v21, %v2646_v35 }
 0x6e5   :  { %v603_v18 = vpop.permute.xlu0 %602 }
 0x6e6   :  { %v605_v20 = vmul.f32 %v2330_v17, %v603_v18 }
 0x6e8   :  { %607 = vrot.lane.b32.xlu0 %v605_v20, %s2432_s5 }
 0x6eb   :  { %v674_v24 = vpop.permute.xlu1 %673 }
 0x6ec   :  { %v676_v25 = vmul.f32 %v2332_v21, %v674_v24 }
 0x6ee   :  { %678 = vrot.lane.b32.xlu1 %v676_v25, %s2432_s5 }
 0x75a   :  { %v608_v27 = vpop.permute.xlu0 %607 }
 0x75b   :  { %v2688_v28 = vadd.f32 %v608_v27, %v600_v26 }
 0x75d   :  { %2333 = vtanh.f32 %v2688_v28 }
 0x760   :  { %v679_v30 = vpop.permute.xlu1 %678 }
 0x761   :  { %v2692_v31 = vadd.f32 %v679_v30, %v671_v29 }
 0x763   :  { %2335 = vtanh.f32 %v2692_v31 }
 0x767   :  { %v2334_v32 = vpop.eup %2333 }
 0x768   :  { %613 = vrot.lane.b32.xlu0 %v2334_v32, %s2432_s5 }
 0x76d   :  { %v2336_v33 = vpop.eup %2335 }
 0x76e   :  { %684 = vrot.lane.b32.xlu1 %v2336_v33, %s2432_s5 }
 0x7da   :  { %v614_v34 = vpop.permute.xlu0 %613 }
 0x7db   :  { %v2697_v36 = vmul.f32 %v2330_v17, %v614_v34 }
 0x7dd   :  { %v689_v37 = vpack.c.bf16 %v2697_v36, %v2697_v36 }
 0x7df   :  { %691 = vrot.lane.b32.xlu0 %v689_v37, %s2433_s1 }
 0x7e0   :  { %v685_v35 = vpop.permute.xlu1 %684 }
 0x7e1   :  { %v687_v38 = vmul.f32 %v2332_v21, %v685_v35 }
 0x7e3   :  { %v688_v39 = vpack.c.bf16 %v687_v38, %v687_v38 }
 0x7e5   :  { %737 = vrot.lane.b32.xlu1 %v688_v39, %s2433_s1 }
 0x851   :  { %v692_v40 = vpop.permute.xlu0 %691 }
 0x852   :  { %2134 = vmatmul.mubr.msk.bf16.vlgmr.msra.gmra.mrb[20].mxu1 %vm210_vm2, %v692_v40 }
 0x853   :  { %2146 = vmatpush3.bf16.msra.mxu1 %v2518_v3  ;;  %2149 = vmatprep.mubr.msk.bf16.mxu1 %vm2431_vm1, %v2430_v4 }
 0x854   :  { %2147 = vmatprep.subr.bf16.mxu1 %v2430_v4 }
 0x857   :  { %2148 = vmatpush3.bf16.msra.mxu1 %v2535_v7  ;;  %v738_v41 = vpop.permute.xlu1 %737 }
 0x858   :  { %2142 = vmatmul.mubr.msk.bf16.vlgmr.msra.gmra.mrb[16].mxu0 %vm210_vm2, %v738_v41  ;;  %2161 = vmatprep.subr.bf16.mxu1 %v2430_v4 }
 0x859   :  { %2154 = vmatpush3.bf16.msra.mxu0 %v2579_v44  ;;  %2157 = vmatprep.mubr.msk.bf16.mxu0 %vm2431_vm1, %v2430_v4 }
 0x85a   :  { %2150 = vmatmul.mubr.msk.bf16.vlgmr.msra.gmra.mrb[24].mxu1 %vm210_vm2, %v738_v41  ;;  %2155 = vmatprep.subr.bf16.mxu0 %v2430_v4 }
 0x85b   :  { %2162 = vmatpush3.bf16.msra.mxu1 %v2593_v47  ;;  %2165 = vmatprep.mubr.msk.bf16.mxu1 %vm2431_vm1, %v2430_v4 }
 0x85c   :  { %2163 = vmatprep.subr.bf16.mxu1 %v2430_v4 }
 0x85d   :  { %2156 = vmatpush3.bf16.msra.mxu0 %v2587_v46 }
 0x85e   :  { %2169 = vmatprep.subr.bf16.mxu0 %v2430_v4 }
 0x85f   :  { %2164 = vmatpush3.bf16.msra.mxu1 %v2600_v48 }
 0x860   :  { %2177 = vmatprep.subr.bf16.mxu1 %v2430_v4 }
 0x925   :  { %v730_v42 = vpop.f32.mrb[20].mxu1 }
 0x926   :  { %v2135_v43 = vpop.f32.mrb[21].mxu1 }
 0x927   :  { %v733_v49 = vpop.f32.mrb[22].mxu1 }
 0x928   :  { %v2136_v50 = vpop.f32.mrb[23].mxu1 }
 0x92b   :  { %v776_v51 = vpop.f32.mrb[16].mxu0 }
 0x92c   :  { %v777_v52 = vadd.f32 %v776_v51, %v730_v42  ;;  %v2143_v53 = vpop.f32.mrb[17].mxu0 }
 0x92d   :  { %v779_v54 = vpop.f32.mrb[18].mxu0  ;;  %v847_v55 = vpop.f32.mrb[24].mxu1 }
 0x92e   :  { %v782_v56 = vadd.f32 %v2633_v59, %v777_v52  ;;  %v853_v57 = vadd.f32 %v847_v55, %v2563_v23  ;;  %v2144_v58 = vpop.f32.mrb[19].mxu0  ;;  %v2151_v60 = vpop.f32.mrb[25].mxu1 }
 0x92f   :  { %v850_v61 = vpop.f32.mrb[26].mxu1 }
 0x930   :  { %2337 = vtanh.f32 %v782_v56  ;;  %v2152_v62 = vpop.f32.mrb[27].mxu1  ;;  %v1945_v1 = vmul.f32 -1.442695, %v782_v56  ;;  %v1947_v2 = vmul.f32 -1.442695, %v853_v57 }
 0x931   :  { %2339 = vtanh.f32 %v853_v57 }
 0x932   :  { %2341 = vpow2.f32 %v1945_v1 }
 0x933   :  { %2343 = vpow2.f32 %v1947_v2 }
 0x93a   :  { %v2338_v63 = vpop.eup %2337 }
 0x93b   :  { %v2340_v0 = vpop.eup %2339  ;;  %792 = vrot.lane.b32.xlu0 %v2338_v63, %s2432_s5 }
 0x93c   :  { %863 = vrot.lane.b32.xlu1 %v2340_v0, %s2432_s5  ;;  %v2342_v5 = vpop.eup %2341 }
 0x93d   :  { %v2344_v6 = vpop.eup %2343  ;;  %v786_v8 = vadd.f32 1.0, %v2342_v5 }
 0x93e   :  { %v857_v23 = vadd.f32 1.0, %v2344_v6 }
 0x93f   :  { %2345 = vrcp.f32 %v786_v8 }
 0x940   :  { %2347 = vrcp.f32 %v857_v23 }
 0x949   :  { %v2346_v9 = vpop.eup %2345 }
 0x94a   :  { %v2348_v11 = vpop.eup %2347  ;;  %v790_v17 = vmul.f32 %v2346_v9, %v2688_v28 }
 0x94b   :  { %v861_v18 = vmul.f32 %v2348_v11, %v2692_v31 }
 0x9ad   :  { %v793_v10 = vpop.permute.xlu0 %792 }
 0x9ae   :  { %v864_v13 = vpop.permute.xlu1 %863  ;;  %v795_v14 = vmul.f32 %v2346_v9, %v793_v10 }
 0x9af   :  { %v866_v16 = vmul.f32 %v2348_v11, %v864_v13 }
 0x9b0   :  { %797 = vrot.lane.b32.xlu0 %v795_v14, %s2432_s5 }
 0x9b1   :  { %868 = vrot.lane.b32.xlu1 %v866_v16, %s2432_s5 }
 0xa22   :  { %v798_v20 = vpop.permute.xlu0 %797 }
 0xa23   :  { %v869_v21 = vpop.permute.xlu1 %868  ;;  %v2732_v24 = vadd.f32 %v798_v20, %v790_v17 }
 0xa24   :  { %v2734_v25 = vadd.f32 %v869_v21, %v861_v18 }
 0xa25   :  { %2349 = vtanh.f32 %v2732_v24 }
 0xa26   :  { %2351 = vtanh.f32 %v2734_v25 }
 0xa2f   :  { %v2350_v26 = vpop.eup %2349 }
 0xa30   :  { %v2352_v27 = vpop.eup %2351  ;;  %803 = vrot.lane.b32.xlu0 %v2350_v26, %s2432_s5 }
 0xa31   :  { %874 = vrot.lane.b32.xlu1 %v2352_v27, %s2432_s5 }
 0xaa2   :  { %v804_v29 = vpop.permute.xlu0 %803 }
 0xaa3   :  { %v875_v28 = vpop.permute.xlu1 %874  ;;  %v2740_v30 = vmul.f32 %v2346_v9, %v804_v29 }
 0xaa4   :  { %v877_v31 = vmul.f32 %v2348_v11, %v875_v28 }
 0xaa5   :  { %v879_v32 = vpack.c.bf16 %v2740_v30, %v2740_v30 }
 0xaa6   :  { %v878_v33 = vpack.c.bf16 %v877_v31, %v877_v31 }
 0xaa7   :  { %881 = vrot.lane.b32.xlu0 %v879_v32, %s2433_s1 }
 0xaa8   :  { %927 = vrot.lane.b32.xlu1 %v878_v33, %s2433_s1 }
 0xb19   :  { %v882_v34 = vpop.permute.xlu0 %881 }
 0xb1a   :  { %v928_v37 = vpop.permute.xlu1 %927  ;;  %2158 = vmatmul.mubr.msk.bf16.vlgmr.msra.gmra.mrb[20].mxu0 %vm210_vm2, %v882_v34 }
 0xb1b   :  { %2166 = vmatmul.mubr.msk.bf16.vlgmr.msra.gmra.mrb[28].mxu1 %vm210_vm2, %v928_v37  ;;  %2170 = vmatpush3.bf16.msra.mxu0 %v2518_v3 }
 0xb1c   :  { %2171 = vmatprep.subr.bf16.mxu0 %v2430_v4  ;;  %2173 = vmatprep.mubr.msk.bf16.mxu0 %vm2431_vm1, %v2430_v4 }
 0xb1d   :  { %2178 = vmatpush3.bf16.msra.mxu1 %v2579_v44  ;;  %2181 = vmatprep.mubr.msk.bf16.mxu1 %vm2431_vm1, %v2430_v4 }
 0xb1e   :  { %2179 = vmatprep.subr.bf16.mxu1 %v2430_v4 }
 0xb1f   :  { %2172 = vmatpush3.bf16.msra.mxu0 %v2535_v7 }
 0xb20   :  { %2185 = vmatprep.subr.bf16.mxu0 %v2430_v4 }
 0xb21   :  { %2180 = vmatpush3.bf16.msra.mxu1 %v2587_v46 }
 0xb22   :  { %2174 = vmatmul.mubr.msk.bf16.vlgmr.msra.gmra.mrb[24].mxu0 %vm210_vm2, %v928_v37  ;;  %2193 = vmatprep.subr.bf16.mxu1 %v2430_v4 }
 0xb23   :  { %2186 = vmatpush3.bf16.msra.mxu0 %v2593_v47  ;;  %2189 = vmatprep.mubr.msk.bf16.mxu0 %vm2431_vm1, %v2430_v4 }
 0xb24   :  { %2187 = vmatprep.subr.bf16.mxu0 %v2430_v4 }
 0xb27   :  { %2188 = vmatpush3.bf16.msra.mxu0 %v2600_v48 }
 0xb28   :  { %2201 = vmatprep.subr.bf16.mxu0 %v2430_v4 }
 0xbed   :  { %v920_v35 = vpop.f32.mrb[20].mxu0 }
 0xbee   :  { %v966_v38 = vpop.f32.mrb[28].mxu1  ;;  %v2159_v39 = vpop.f32.mrb[21].mxu0 }
 0xbef   :  { %v967_v40 = vadd.f32 %v966_v38, %v920_v35  ;;  %v2167_v41 = vpop.f32.mrb[29].mxu1  ;;  %v923_v42 = vpop.f32.mrb[22].mxu0 }
 0xbf0   :  { %v969_v43 = vpop.f32.mrb[30].mxu1  ;;  %v2160_v49 = vpop.f32.mrb[23].mxu0 }
 0xbf1   :  { %v972_v50 = vadd.f32 %v2633_v59, %v967_v40  ;;  %v2168_v51 = vpop.f32.mrb[31].mxu1 }
 0xbf3   :  { %2353 = vtanh.f32 %v972_v50  ;;  %v1950_v60 = vmul.f32 -1.442695, %v972_v50 }
 0xbf5   :  { %v1037_v52 = vpop.f32.mrb[24].mxu0 }
 0xbf6   :  { %v1043_v53 = vadd.f32 %v1037_v52, %v2555_v15  ;;  %v2175_v54 = vpop.f32.mrb[25].mxu0 }
 0xbf7   :  { %v1040_v55 = vpop.f32.mrb[26].mxu0 }
 0xbf8   :  { %2355 = vtanh.f32 %v1043_v53  ;;  %v2176_v56 = vpop.f32.mrb[27].mxu0  ;;  %v1952_v61 = vmul.f32 -1.442695, %v1043_v53 }
 0xbf9   :  { %2357 = vpow2.f32 %v1950_v60 }
 0xbfa   :  { %2359 = vpow2.f32 %v1952_v61 }
 0xbfd   :  { %v2354_v57 = vpop.eup %2353 }
 0xbfe   :  { %982 = vrot.lane.b32.xlu0 %v2354_v57, %s2432_s5 }
 0xc02   :  { %v2356_v58 = vpop.eup %2355 }
 0xc03   :  { %1053 = vrot.lane.b32.xlu1 %v2356_v58, %s2432_s5  ;;  %v2358_v62 = vpop.eup %2357 }
 0xc04   :  { %v976_v63 = vadd.f32 1.0, %v2358_v62  ;;  %v2360_v0 = vpop.eup %2359 }
 0xc05   :  { %v1047_v1 = vadd.f32 1.0, %v2360_v0 }
 0xc06   :  { %2361 = vrcp.f32 %v976_v63 }
 0xc07   :  { %2363 = vrcp.f32 %v1047_v1 }
 0xc10   :  { %v2362_v15 = vpop.eup %2361 }
 0xc11   :  { %v2364_v6 = vpop.eup %2363  ;;  %v980_v9 = vmul.f32 %v2362_v15, %v2732_v24 }
 0xc12   :  { %v1051_v13 = vmul.f32 %v2364_v6, %v2734_v25 }
 0xc70   :  { %v983_v2 = vpop.permute.xlu0 %982 }
 0xc71   :  { %v985_v5 = vmul.f32 %v2362_v15, %v983_v2 }
 0xc73   :  { %987 = vrot.lane.b32.xlu0 %v985_v5, %s2432_s5 }
 0xc75   :  { %v1054_v8 = vpop.permute.xlu1 %1053 }
 0xc76   :  { %v1056_v23 = vmul.f32 %v2364_v6, %v1054_v8 }
 0xc78   :  { %1058 = vrot.lane.b32.xlu1 %v1056_v23, %s2432_s5 }
 0xce5   :  { %v988_v10 = vpop.permute.xlu0 %987 }
 0xce6   :  { %v2774_v11 = vadd.f32 %v988_v10, %v980_v9 }
 0xce8   :  { %2365 = vtanh.f32 %v2774_v11 }
 0xcea   :  { %v1059_v14 = vpop.permute.xlu1 %1058 }
 0xceb   :  { %v2778_v16 = vadd.f32 %v1059_v14, %v1051_v13 }
 0xced   :  { %2367 = vtanh.f32 %v2778_v16 }
 0xcf2   :  { %v2366_v17 = vpop.eup %2365 }
 0xcf3   :  { %993 = vrot.lane.b32.xlu0 %v2366_v17, %s2432_s5 }
 0xcf7   :  { %v2368_v18 = vpop.eup %2367 }
 0xcf8   :  { %1064 = vrot.lane.b32.xlu1 %v2368_v18, %s2432_s5 }
 0xd65   :  { %v994_v20 = vpop.permute.xlu0 %993 }
 0xd66   :  { %v2783_v21 = vmul.f32 %v2362_v15, %v994_v20 }
 0xd68   :  { %v1069_v24 = vpack.c.bf16 %v2783_v21, %v2783_v21 }
 0xd6a   :  { %1071 = vrot.lane.b32.xlu0 %v1069_v24, %s2433_s1  ;;  %v1065_v25 = vpop.permute.xlu1 %1064 }
 0xd6b   :  { %v1067_v26 = vmul.f32 %v2364_v6, %v1065_v25 }
 0xd6d   :  { %v1068_v27 = vpack.c.bf16 %v1067_v26, %v1067_v26 }
 0xd6f   :  { %1117 = vrot.lane.b32.xlu1 %v1068_v27, %s2433_s1 }
 0xddc   :  { %v1072_v29 = vpop.permute.xlu0 %1071 }
 0xddd   :  { %2182 = vmatmul.mubr.msk.bf16.vlgmr.msra.gmra.mrb[32].mxu1 %vm210_vm2, %v1072_v29 }
 0xdde   :  { %2194 = vmatpush3.bf16.msra.mxu1 %v2518_v3  ;;  %2197 = vmatprep.mubr.msk.bf16.mxu1 %vm2431_vm1, %v2430_v4 }
 0xddf   :  { %2195 = vmatprep.subr.bf16.mxu1 %v2430_v4 }
 0xde1   :  { %v1118_v28 = vpop.permute.xlu1 %1117 }
 0xde2   :  { %2196 = vmatpush3.bf16.msra.mxu1 %v2535_v7  ;;  %2190 = vmatmul.mubr.msk.bf16.vlgmr.msra.gmra.mrb[28].mxu0 %vm210_vm2, %v1118_v28 }
 0xde3   :  { %2209 = vmatprep.subr.bf16.mxu1 %v2430_v4  ;;  %2202 = vmatpush3.bf16.msra.mxu0 %v2579_v44 }
 0xde4   :  { %2203 = vmatprep.subr.bf16.mxu0 %v2430_v4  ;;  %2205 = vmatprep.mubr.msk.bf16.mxu0 %vm2431_vm1, %v2430_v4 }
 0xde5   :  { %2198 = vmatmul.mubr.msk.bf16.vlgmr.msra.gmra.mrb[36].mxu1 %vm210_vm2, %v1118_v28 }
 0xde6   :  { %2210 = vmatpush3.bf16.msra.mxu1 %v2593_v47  ;;  %2213 = vmatprep.mubr.msk.bf16.mxu1 %vm2431_vm1, %v2430_v4 }
 0xde7   :  { %2211 = vmatprep.subr.bf16.mxu1 %v2430_v4  ;;  %2204 = vmatpush3.bf16.msra.mxu0 %v2587_v46 }
 0xde8   :  { %2217 = vmatprep.subr.bf16.mxu0 %v2430_v4 }
 0xdea   :  { %2212 = vmatpush3.bf16.msra.mxu1 %v2600_v48 }
 0xdeb   :  { %2225 = vmatprep.subr.bf16.mxu1 %v2430_v4 }
 0xeb0   :  { %v1110_v31 = vpop.f32.mrb[32].mxu1 }
 0xeb1   :  { %v2183_v32 = vpop.f32.mrb[33].mxu1 }
 0xeb2   :  { %v1113_v33 = vpop.f32.mrb[34].mxu1 }
 0xeb3   :  { %v2184_v34 = vpop.f32.mrb[35].mxu1 }
 0xeb5   :  { %v1156_v37 = vpop.f32.mrb[28].mxu0 }
 0xeb6   :  { %v1157_v35 = vadd.f32 %v1156_v37, %v1110_v31  ;;  %v2191_v38 = vpop.f32.mrb[29].mxu0 }
 0xeb7   :  { %v1159_v39 = vpop.f32.mrb[30].mxu0 }
 0xeb8   :  { %v1162_v40 = vadd.f32 %v2633_v59, %v1157_v35  ;;  %v1227_v41 = vpop.f32.mrb[36].mxu1  ;;  %v2192_v42 = vpop.f32.mrb[31].mxu0 }
 0xeb9   :  { %v1233_v43 = vadd.f32 %v1227_v41, %v2561_v22  ;;  %v2199_v49 = vpop.f32.mrb[37].mxu1 }
 0xeba   :  { %2369 = vtanh.f32 %v1162_v40  ;;  %v1230_v50 = vpop.f32.mrb[38].mxu1  ;;  %v1955_v54 = vmul.f32 -1.442695, %v1162_v40 }
 0xebb   :  { %2371 = vtanh.f32 %v1233_v43  ;;  %v2200_v51 = vpop.f32.mrb[39].mxu1  ;;  %v1957_v55 = vmul.f32 -1.442695, %v1233_v43 }
 0xebc   :  { %2373 = vpow2.f32 %v1955_v54 }
 0xebd   :  { %2375 = vpow2.f32 %v1957_v55 }
 0xec4   :  { %v2370_v52 = vpop.eup %2369 }
 0xec5   :  { %v2372_v53 = vpop.eup %2371  ;;  %1172 = vrot.lane.b32.xlu0 %v2370_v52, %s2432_s5 }
 0xec6   :  { %1243 = vrot.lane.b32.xlu1 %v2372_v53, %s2432_s5  ;;  %v2374_v56 = vpop.eup %2373 }
 0xec7   :  { %v2376_v57 = vpop.eup %2375  ;;  %v1166_v58 = vadd.f32 1.0, %v2374_v56 }
 0xec8   :  { %v1237_v60 = vadd.f32 1.0, %v2376_v57 }
 0xec9   :  { %2377 = vrcp.f32 %v1166_v58 }
 0xeca   :  { %2379 = vrcp.f32 %v1237_v60 }
 0xed3   :  { %v2378_v22 = vpop.eup %2377 }
 0xed4   :  { %v2380_v62 = vpop.eup %2379  ;;  %v1170_v15 = vmul.f32 %v2378_v22, %v2774_v11 }
 0xed5   :  { %v1241_v2 = vmul.f32 %v2380_v62, %v2778_v16 }
 0xf37   :  { %v1173_v61 = vpop.permute.xlu0 %1172 }
 0xf38   :  { %v1244_v63 = vpop.permute.xlu1 %1243  ;;  %v1175_v0 = vmul.f32 %v2378_v22, %v1173_v61 }
 0xf39   :  { %v1246_v1 = vmul.f32 %v2380_v62, %v1244_v63 }
 0xf3a   :  { %1177 = vrot.lane.b32.xlu0 %v1175_v0, %s2432_s5 }
 0xf3b   :  { %1248 = vrot.lane.b32.xlu1 %v1246_v1, %s2432_s5 }
 0xfac   :  { %v1178_v5 = vpop.permute.xlu0 %1177 }
 0xfad   :  { %v1249_v6 = vpop.permute.xlu1 %1248  ;;  %v2818_v8 = vadd.f32 %v1178_v5, %v1170_v15 }
 0xfae   :  { %v2820_v23 = vadd.f32 %v1249_v6, %v1241_v2 }
 0xfaf   :  { %2381 = vtanh.f32 %v2818_v8 }
 0xfb0   :  { %2383 = vtanh.f32 %v2820_v23 }
 0xfb9   :  { %v2382_v9 = vpop.eup %2381 }
 0xfba   :  { %v2384_v10 = vpop.eup %2383  ;;  %1183 = vrot.lane.b32.xlu0 %v2382_v9, %s2432_s5 }
 0xfbb   :  { %1254 = vrot.lane.b32.xlu1 %v2384_v10, %s2432_s5  ;;  %v2426_v10 = vld [vmem:[%s3006_s4 + $0x8] sm:$0xff]  }
0x102c   :  { %v1184_v13 = vpop.permute.xlu0 %1183 }
0x102d   :  { %v1255_v11 = vpop.permute.xlu1 %1254  ;;  %v2826_v14 = vmul.f32 %v2378_v22, %v1184_v13  ;;  %v2427_v13 = vld [vmem:[%s3010_s7] sm:$0xff]  }
0x102e   :  { %v1257_v16 = vmul.f32 %v2380_v62, %v1255_v11  ;;  %v2428_v11 = vld [vmem:[%s3010_s7 + $0x8] sm:$0xff]  }
0x102f   :  { %v1259_v17 = vpack.c.bf16 %v2826_v14, %v2826_v14 }
0x1030   :  { %v1258_v18 = vpack.c.bf16 %v1257_v16, %v1257_v16 }
0x1031   :  { %1261 = vrot.lane.b32.xlu0 %v1259_v17, %s2433_s1 }
0x1032   :  { %1307 = vrot.lane.b32.xlu1 %v1258_v18, %s2433_s1 }
0x10a3   :  { %v1262_v20 = vpop.permute.xlu0 %1261 }
0x10a4   :  { %v1308_v24 = vpop.permute.xlu1 %1307  ;;  %2206 = vmatmul.mubr.msk.bf16.vlgmr.msra.gmra.mrb[32].mxu0 %vm210_vm2, %v1262_v20 }
0x10a5   :  { %2214 = vmatmul.mubr.msk.bf16.vlgmr.msra.gmra.mrb[40].mxu1 %vm210_vm2, %v1308_v24  ;;  %2218 = vmatpush3.bf16.msra.mxu0 %v2518_v3 }
0x10a6   :  { %2219 = vmatprep.subr.bf16.mxu0 %v2430_v4  ;;  %2221 = vmatprep.mubr.msk.bf16.mxu0 %vm2431_vm1, %v2430_v4 }
0x10a7   :  { %2226 = vmatpush3.bf16.msra.mxu1 %v2579_v44  ;;  %2229 = vmatprep.mubr.msk.bf16.mxu1 %vm2431_vm1, %v2430_v4 }
0x10a8   :  { %2227 = vmatprep.subr.bf16.mxu1 %v2430_v4 }
0x10a9   :  { %2220 = vmatpush3.bf16.msra.mxu0 %v2535_v7 }
0x10aa   :  { %2233 = vmatprep.subr.bf16.mxu0 %v2430_v4 }
0x10ab   :  { %2228 = vmatpush3.bf16.msra.mxu1 %v2587_v46 }
0x10ac   :  { %2222 = vmatmul.mubr.msk.bf16.vlgmr.msra.gmra.mrb[36].mxu0 %vm210_vm2, %v1308_v24  ;;  %2241 = vmatprep.subr.bf16.mxu1 %v2430_v4 }
0x10ad   :  { %2234 = vmatpush3.bf16.msra.mxu0 %v2593_v47  ;;  %2237 = vmatprep.mubr.msk.bf16.mxu0 %vm2431_vm1, %v2430_v4 }
0x10ae   :  { %2235 = vmatprep.subr.bf16.mxu0 %v2430_v4 }
0x10b1   :  { %2236 = vmatpush3.bf16.msra.mxu0 %v2600_v48 }
0x10b2   :  { %2249 = vmatprep.subr.bf16.mxu0 %v2430_v4 }
0x1177   :  { %v1300_v3 = vpop.f32.mrb[32].mxu0 }
0x1178   :  { %v1346_v7 = vpop.f32.mrb[40].mxu1  ;;  %v2207_v44 = vpop.f32.mrb[33].mxu0 }
0x1179   :  { %v1347_v25 = vadd.f32 %v1346_v7, %v1300_v3  ;;  %v2215_v46 = vpop.f32.mrb[41].mxu1  ;;  %v1303_v26 = vpop.f32.mrb[34].mxu0 }
0x117a   :  { %v1349_v27 = vpop.f32.mrb[42].mxu1  ;;  %v2208_v29 = vpop.f32.mrb[35].mxu0 }
0x117b   :  { %v1352_v28 = vadd.f32 %v2633_v59, %v1347_v25  ;;  %v2216_v31 = vpop.f32.mrb[43].mxu1 }
0x117d   :  { %2385 = vtanh.f32 %v1352_v28  ;;  %v1960_v40 = vmul.f32 -1.442695, %v1352_v28 }
0x117f   :  { %v1417_v32 = vpop.f32.mrb[36].mxu0 }
0x1180   :  { %v1423_v33 = vadd.f32 %v1417_v32, %v2553_v12  ;;  %v2223_v34 = vpop.f32.mrb[37].mxu0 }
0x1181   :  { %v1420_v37 = vpop.f32.mrb[38].mxu0 }
0x1182   :  { %2387 = vtanh.f32 %v1423_v33  ;;  %v2224_v35 = vpop.f32.mrb[39].mxu0  ;;  %v1962_v41 = vmul.f32 -1.442695, %v1423_v33 }
0x1183   :  { %2389 = vpow2.f32 %v1960_v40 }
0x1184   :  { %2391 = vpow2.f32 %v1962_v41 }
0x1187   :  { %v2386_v38 = vpop.eup %2385 }
0x1188   :  { %1362 = vrot.lane.b32.xlu0 %v2386_v38, %s2432_s5 }
0x118c   :  { %v2388_v39 = vpop.eup %2387 }
0x118d   :  { %1433 = vrot.lane.b32.xlu1 %v2388_v39, %s2432_s5  ;;  %v2390_v42 = vpop.eup %2389 }
0x118e   :  { %v1356_v43 = vadd.f32 1.0, %v2390_v42  ;;  %v2392_v49 = vpop.eup %2391 }
0x118f   :  { %v1427_v50 = vadd.f32 1.0, %v2392_v49 }
0x1190   :  { %2393 = vrcp.f32 %v1356_v43 }
0x1191   :  { %2395 = vrcp.f32 %v1427_v50 }
0x119a   :  { %v2394_v12 = vpop.eup %2393 }
0x119b   :  { %v2396_v53 = vpop.eup %2395  ;;  %v1360_v56 = vmul.f32 %v2394_v12, %v2818_v8 }
0x119c   :  { %v1431_v60 = vmul.f32 %v2396_v53, %v2820_v23  ;;  %v2425_v23 = vld [vmem:[%s3006_s4] sm:$0xff]  }
0x11fa   :  { %v1363_v51 = vpop.permute.xlu0 %1362 }
0x11fb   :  { %v1365_v52 = vmul.f32 %v2394_v12, %v1363_v51 }
0x11fd   :  { %1367 = vrot.lane.b32.xlu0 %v1365_v52, %s2432_s5 }
0x11ff   :  { %v1434_v54 = vpop.permute.xlu1 %1433 }
0x1200   :  { %v1436_v55 = vmul.f32 %v2396_v53, %v1434_v54 }
0x1202   :  { %1438 = vrot.lane.b32.xlu1 %v1436_v55, %s2432_s5 }
0x126f   :  { %v1368_v57 = vpop.permute.xlu0 %1367 }
0x1270   :  { %v2860_v58 = vadd.f32 %v1368_v57, %v1360_v56 }
0x1272   :  { %2397 = vtanh.f32 %v2860_v58 }
0x1274   :  { %v1439_v22 = vpop.permute.xlu1 %1438 }
0x1275   :  { %v2864_v61 = vadd.f32 %v1439_v22, %v1431_v60 }
0x1277   :  { %2399 = vtanh.f32 %v2864_v61 }
0x127c   :  { %v2398_v62 = vpop.eup %2397 }
0x127d   :  { %1373 = vrot.lane.b32.xlu0 %v2398_v62, %s2432_s5 }
0x1281   :  { %v2400_v63 = vpop.eup %2399 }
0x1282   :  { %1444 = vrot.lane.b32.xlu1 %v2400_v63, %s2432_s5 }
0x12ef   :  { %v1374_v0 = vpop.permute.xlu0 %1373 }
0x12f0   :  { %v2869_v1 = vmul.f32 %v2394_v12, %v1374_v0 }
0x12f2   :  { %v1449_v15 = vpack.c.bf16 %v2869_v1, %v2869_v1 }
0x12f4   :  { %1451 = vrot.lane.b32.xlu0 %v1449_v15, %s2433_s1  ;;  %v1445_v2 = vpop.permute.xlu1 %1444 }
0x12f5   :  { %v1447_v5 = vmul.f32 %v2396_v53, %v1445_v2 }
0x12f7   :  { %v1448_v6 = vpack.c.bf16 %v1447_v5, %v1447_v5 }
0x12f9   :  { %1497 = vrot.lane.b32.xlu1 %v1448_v6, %s2433_s1 }
0x1366   :  { %v1452_v8 = vpop.permute.xlu0 %1451 }
0x1367   :  { %2230 = vmatmul.mubr.msk.bf16.vlgmr.msra.gmra.mrb[44].mxu1 %vm210_vm2, %v1452_v8 }
0x1368   :  { %2242 = vmatpush3.bf16.msra.mxu1 %v2425_v23  ;;  %2245 = vmatprep.mubr.msk.bf16.mxu1 %vm2431_vm1, %v2430_v4  ;;  %v2429_v23 = vld [vmem:[%s3012_s8] ss:$0 sm:$0xff]  ;;  %s2434_s8 = smov 96  }
0x1369   :  { %2243 = vmatprep.subr.bf16.mxu1 %v2430_v4 }
0x136b   :  { %v1498_v9 = vpop.permute.xlu1 %1497 }
0x136c   :  { %2244 = vmatpush3.bf16.msra.mxu1 %v2426_v10  ;;  %2238 = vmatmul.mubr.msk.bf16.vlgmr.msra.gmra.mrb[40].mxu0 %vm210_vm2, %v1498_v9 }
0x136d   :  { %2257 = vmatprep.subr.bf16.mxu1 %v2430_v4  ;;  %2250 = vmatpush3.bf16.msra.mxu0 %v2427_v13 }
0x136e   :  { %2251 = vmatprep.subr.bf16.mxu0 %v2430_v4  ;;  %2253 = vmatprep.mubr.msk.bf16.mxu0 %vm2431_vm1, %v2430_v4 }
0x136f   :  { %2246 = vmatmul.mubr.msk.bf16.vlgmr.msra.gmra.mrb[48].mxu1 %vm210_vm2, %v1498_v9 }
0x1370   :  { %2258 = vmatpush3.bf16.msra.mxu1 %v2593_v47  ;;  %2261 = vmatprep.mubr.msk.bf16.mxu1 %vm2431_vm1, %v2430_v4 }
0x1371   :  { %2259 = vmatprep.subr.bf16.mxu1 %v2430_v4  ;;  %2252 = vmatpush3.bf16.msra.mxu0 %v2428_v11 }
0x1374   :  { %2260 = vmatpush3.bf16.msra.mxu1 %v2600_v48 }
0x143a   :  { %v1490_v16 = vpop.f32.mrb[44].mxu1 }
0x143b   :  { %v2231_v17 = vpop.f32.mrb[45].mxu1 }
0x143c   :  { %v1493_v18 = vpop.f32.mrb[46].mxu1 }
0x143d   :  { %v2232_v20 = vpop.f32.mrb[47].mxu1 }
0x143f   :  { %v1536_v24 = vpop.f32.mrb[40].mxu0 }
0x1440   :  { %v1537_v3 = vadd.f32 %v1536_v24, %v1490_v16  ;;  %v2239_v7 = vpop.f32.mrb[41].mxu0 }
0x1441   :  { %v1539_v47 = vpop.f32.mrb[42].mxu0 }
0x1442   :  { %v1542_v44 = vadd.f32 %v2633_v59, %v1537_v3  ;;  %v1607_v25 = vpop.f32.mrb[48].mxu1  ;;  %v2240_v46 = vpop.f32.mrb[43].mxu0 }
0x1443   :  { %v1613_v4 = vadd.f32 %v1607_v25, %v2559_v19  ;;  %v2247_v26 = vpop.f32.mrb[49].mxu1  ;;  %v2296_v46 = vld [vmem:[%s3013_s9 + $0x8] sm:$0xff]  }
0x1444   :  { %2401 = vtanh.f32 %v1542_v44  ;;  %v1610_v27 = vpop.f32.mrb[50].mxu1  ;;  %v1965_v31 = vmul.f32 -1.442695, %v1542_v44 }
0x1445   :  { %2403 = vtanh.f32 %v1613_v4  ;;  %v2248_v29 = vpop.f32.mrb[51].mxu1  ;;  %v1967_v32 = vmul.f32 -1.442695, %v1613_v4 }
0x1446   :  { %2405 = vpow2.f32 %v1965_v31 }
0x1447   :  { %2407 = vpow2.f32 %v1967_v32 }
0x144e   :  { %v2402_v48 = vpop.eup %2401 }
0x144f   :  { %v2404_v28 = vpop.eup %2403  ;;  %1552 = vrot.lane.b32.xlu0 %v2402_v48, %s2432_s5 }
0x1450   :  { %1623 = vrot.lane.b32.xlu1 %v2404_v28, %s2432_s5  ;;  %v2406_v59 = vpop.eup %2405 }
0x1451   :  { %v2408_v33 = vpop.eup %2407  ;;  %v1546_v34 = vadd.f32 1.0, %v2406_v59 }
0x1452   :  { %v1617_v37 = vadd.f32 1.0, %v2408_v33 }
0x1453   :  { %2409 = vrcp.f32 %v1546_v34 }
0x1454   :  { %2411 = vrcp.f32 %v1617_v37 }
0x145d   :  { %v2410_v19 = vpop.eup %2409 }
0x145e   :  { %v2412_v38 = vpop.eup %2411  ;;  %v1550_v42 = vmul.f32 %v2410_v19, %v2860_v58 }
0x145f   :  { %v1621_v43 = vmul.f32 %v2412_v38, %v2864_v61 }
0x14c1   :  { %v1553_v35 = vpop.permute.xlu0 %1552 }
0x14c2   :  { %v1624_v39 = vpop.permute.xlu1 %1623  ;;  %v1555_v40 = vmul.f32 %v2410_v19, %v1553_v35 }
0x14c3   :  { %v1626_v41 = vmul.f32 %v2412_v38, %v1624_v39 }
0x14c4   :  { %1557 = vrot.lane.b32.xlu0 %v1555_v40, %s2432_s5 }
0x14c5   :  { %1628 = vrot.lane.b32.xlu1 %v1626_v41, %s2432_s5 }
0x1536   :  { %v1558_v49 = vpop.permute.xlu0 %1557 }
0x1537   :  { %v1629_v50 = vpop.permute.xlu1 %1628  ;;  %v1560_v12 = vadd.f32 %v1558_v49, %v1550_v42 }
0x1538   :  { %v2910_v51 = vadd.f32 %v1629_v50, %v1621_v43  ;;  %v1971_v43 = vld [vmem:[%s3016_s10] ss:$0 sm:$0xff] }
0x1539   :  { %2413 = vtanh.f32 %v1560_v12 }
0x153a   :  { %2415 = vtanh.f32 %v2910_v51 }
0x1543   :  { %v2414_v52 = vpop.eup %2413 }
0x1544   :  { %v2416_v53 = vpop.eup %2415  ;;  %1563 = vrot.lane.b32.xlu0 %v2414_v52, %s2432_s5 }
0x1545   :  { %1634 = vrot.lane.b32.xlu1 %v2416_v53, %s2432_s5 }
0x15b6   :  { %v1564_v54 = vpop.permute.xlu0 %1563 }
0x15b7   :  { %v1635_v55 = vpop.permute.xlu1 %1634  ;;  %v1566_v56 = vmul.f32 %v2410_v19, %v1564_v54 }
0x15b8   :  { %v1637_v57 = vmul.f32 %v2412_v38, %v1635_v55 }
0x15b9   :  { %v1639_v58 = vpack.c.bf16 %v1566_v56, %v1566_v56 }
0x15ba   :  { %v1638_v60 = vpack.c.bf16 %v1637_v57, %v1637_v57 }
0x15bb   :  { %1641 = vrot.lane.b32.xlu0 %v1639_v58, %s2433_s1 }
0x15bc   :  { %1687 = vrot.lane.b32.xlu1 %v1638_v60, %s2433_s1 }
0x162d   :  { %v1642_v22 = vpop.permute.xlu0 %1641 }
0x162e   :  { %v1688_v61 = vpop.permute.xlu1 %1687  ;;  %2254 = vmatmul.mubr.msk.bf16.vlgmr.msra.gmra.mrb[44].mxu0 %vm210_vm2, %v1642_v22 }
0x162f   :  { %2262 = vmatmul.mubr.msk.bf16.vlgmr.msra.gmra.mrb[52].mxu1 %vm210_vm2, %v1688_v61 }
0x1701   :  { %v1680_v62 = vpop.f32.mrb[44].mxu0 }
0x1702   :  { %v1726_v63 = vpop.f32.mrb[52].mxu1  ;;  %v2255_v0 = vpop.f32.mrb[45].mxu0 }
0x1703   :  { %v1727_v15 = vadd.f32 %v1726_v63, %v1680_v62  ;;  %v2263_v2 = vpop.f32.mrb[53].mxu1  ;;  %v1683_v5 = vpop.f32.mrb[46].mxu0 }
0x1704   :  { %v1729_v6 = vpop.f32.mrb[54].mxu1  ;;  %v2256_v8 = vpop.f32.mrb[47].mxu0 }
0x1705   :  { %v1732_v9 = vadd.f32 %v2429_v23, %v1727_v15  ;;  %v2264_v10 = vpop.f32.mrb[55].mxu1 }
0x1707   :  { %2417 = vtanh.f32 %v1732_v9  ;;  %v1970_v11 = vmul.f32 -1.442695, %v1732_v9 }
0x1709   :  { %2419 = vpow2.f32 %v1970_v11 }
0x1711   :  { %v2418_v13 = vpop.eup %2417 }
0x1712   :  { %1742 = vrot.lane.b32.xlu0 %v2418_v13, %s2432_s5 }
0x1713   :  { %v2420_v16 = vpop.eup %2419 }
0x1714   :  { %v1736_v17 = vadd.f32 1.0, %v2420_v16 }
0x1716   :  { %2421 = vrcp.f32 %v1736_v17 }
0x1720   :  { %v2422_v18 = vpop.eup %2421 }
0x1721   :  { %v1740_v3 = vmul.f32 %v2422_v18, %v1560_v12 }
0x1784   :  { %v1743_v20 = vpop.permute.xlu0 %1742 }
0x1785   :  { %v1745_v24 = vmul.f32 %v2422_v18, %v1743_v20 }
0x1787   :  { %1747 = vrot.lane.b32.xlu1 %v1745_v24, %s2432_s5 }
0x178b   :  { %428 = vrot.lane.b32.xlu1 %v2654_v45, %s2433_s1 }
0x178f   :  { %808 = vrot.lane.b32.xlu1 %v2740_v30, %s2433_s1  ;;  %v2295_v30 = vld [vmem:[%s3013_s9] sm:$0xff]  }
0x1790   :  { %2265 = vmatprep.subr.bf16.mxu0 %v2295_v30 }
0x1791   :  { %2266 = vmatpush3.bf16.msra.mxu0 %v2295_v30 }
0x1792   :  { %2267 = vmatprep.subr.bf16.mxu0 %v2296_v46 }
0x1793   :  { %1188 = vrot.lane.b32.xlu1 %v2826_v14, %s2433_s1 }
0x1795   :  { %2268 = vmatpush3.bf16.msra.mxu0 %v2296_v46 }
0x1797   :  { %1568 = vrot.lane.b32.xlu1 %v1566_v56, %s2433_s1 }
0x179b   :  { %1883 = vrot.lane.b32.xlu1 %v1637_v57, %s2433_s1 }
0x17f9   :  { %v1748_v7 = vpop.permute.xlu1 %1747 }
0x17fa   :  { %v1750_v47 = vadd.f32 %v1748_v7, %v1740_v3 }
0x17fc   :  { %2423 = vtanh.f32 %v1750_v47  ;;  %1895 = vrot.lane.b32.xlu1 %v1750_v47, %s2434_s8 }
0x17fd   :  { %v429_v44 = vpop.permute.xlu1 %428 }
0x17fe   :  { %431 = vst.msk [vmem:[#allocation3] sm:$0xff] %vm210_vm2, %v429_v44 }
0x1801   :  { %v809_v45 = vpop.permute.xlu1 %808 }
0x1802   :  { %811 = vst.msk [vmem:[#allocation3 + $0x10] sm:$0xff] %vm210_vm2, %v809_v45 }
0x1805   :  { %v1189_v14 = vpop.permute.xlu1 %1188  ;;  %v1762_v28 = vld [vmem:[#allocation3] sm:$0xff] }
0x1806   :  { %v2424_v25 = vpop.eup %2423  ;;  %1191 = vst.msk [vmem:[#allocation3 + $0x20] sm:$0xff] %vm210_vm2, %v1189_v14 }
0x1807   :  { %1753 = vrot.lane.b32.xlu0 %v2424_v25, %s2432_s5 }
0x1809   :  { %v1569_v4 = vpop.permute.xlu1 %1568  ;;  %v1764_v59 = vld [vmem:[#allocation3 + $0x10] sm:$0xff] }
0x180a   :  { %1571 = vst.msk [vmem:[#allocation3 + $0x30] sm:$0xff] %vm210_vm2, %v1569_v4 }
0x180b   :  { %618 = vrot.lane.b32.xlu0 %v2697_v36, %s2433_s1 }
0x180d   :  { %v1884_v26 = vpop.permute.xlu1 %1883  ;;  %v1766_v37 = vld [vmem:[#allocation3 + $0x20] sm:$0xff] }
0x180e   :  { %1886 = vst.msk [vmem:[%s3014_s12] sm:$0xff] %vm210_vm2, %v1884_v26 }
0x180f   :  { %998 = vrot.lane.b32.xlu0 %v2783_v21, %s2433_s1 }
0x1811   :  { %v1768_v40 = vld [vmem:[#allocation3 + $0x30] sm:$0xff] }
0x1813   :  { %1378 = vrot.lane.b32.xlu0 %v2869_v1, %s2433_s1 }
0x186e   :  { %v1896_v27 = vpop.permute.xlu1 %1895 }
0x186f   :  { %1979 = vst.msk [vmem:[%s3015_s13 + $0x8] sm:$0xff] %vm210_vm2, %v1896_v27 }
0x1879   :  { %v1754_v29 = vpop.permute.xlu0 %1753 }
0x187a   :  { %v1756_v36 = vmul.f32 %v2422_v18, %v1754_v29 }
0x187c   :  { %1758 = vrot.lane.b32.xlu0 %v1756_v36, %s2433_s1 }
0x187d   :  { %v619_v48 = vpop.permute.xlu0 %618 }
0x187e   :  { %621 = vst.msk [vmem:[#allocation3 + $0x8] sm:$0xff] %vm210_vm2, %v619_v48 }
0x1880   :  { %1888 = vrot.lane.b32.xlu0 %v2910_v51, %s2434_s8 }
0x1881   :  { %v999_v21 = vpop.permute.xlu0 %998 }
0x1882   :  { %1001 = vst.msk [vmem:[#allocation3 + $0x18] sm:$0xff] %vm210_vm2, %v999_v21 }
0x1885   :  { %v1379_v1 = vpop.permute.xlu0 %1378  ;;  %v1763_v31 = vld [vmem:[#allocation3 + $0x8] sm:$0xff] }
0x1886   :  { %1381 = vst.msk [vmem:[#allocation3 + $0x28] sm:$0xff] %vm210_vm2, %v1379_v1  ;;  %v1770_v32 = vpack.c.bf16 %v1763_v31, %v1762_v28 }
0x1888   :  { %2269 = vmatprep.mubr.msk.bf16.mxu0 %vm210_vm2, %v1770_v32 }
0x1889   :  { %v1765_v33 = vld [vmem:[#allocation3 + $0x18] sm:$0xff] }
0x188a   :  { %v1771_v34 = vpack.c.bf16 %v1765_v33, %v1764_v59 }
0x188c   :  { %2270 = vmatmul.mubr.msk.bf16.vlgmr.msra.gmra.mrb[48].mxu0 %vm210_vm2, %v1771_v34 }
0x188d   :  { %v1767_v19 = vld [vmem:[#allocation3 + $0x28] sm:$0xff] }
0x188e   :  { %v1772_v35 = vpack.c.bf16 %v1767_v19, %v1766_v37 }
0x1890   :  { %2273 = vmatprep.mubr.msk.bf16.mxu0 %vm210_vm2, %v1772_v35 }
0x18ee   :  { %v1759_v38 = vpop.permute.xlu0 %1758 }
0x18ef   :  { %1761 = vst.msk [vmem:[#allocation3 + $0x38] sm:$0xff] %vm210_vm2, %v1759_v38  ;;  %1978 = vst.msk [vmem:[%s3014_s12 + $0x8] sm:$0xff] %vm210_vm2, %v1759_v38 }
0x18f2   :  { %v1889_v39 = vpop.permute.xlu0 %1888 }
0x18f3   :  { %1891 = vst.msk [vmem:[%s3015_s13] sm:$0xff] %vm210_vm2, %v1889_v39 }
0x18f6   :  { %v1769_v41 = vld [vmem:[#allocation3 + $0x38] sm:$0xff] }
0x18f7   :  { %v1773_v42 = vpack.c.bf16 %v1769_v41, %v1768_v40 }
0x18f9   :  { %2274 = vmatmul.mubr.msk.bf16.gmra.mrb[52].mxu0 %vm210_vm2, %v1773_v42 }
0x195f   :  { %v2271_v49 = vpop.f32.mrb[48].mxu0 }
0x1960   :  { %v1852_v50 = vadd.f32 %v2271_v49, %v1971_v43  ;;  %v1843_v12 = vpop.f32.mrb[49].mxu0 }
0x1961   :  { %v1844_v51 = vadd.f32 %v1971_v43, %v1843_v12  ;;  %v2272_v52 = vpop.f32.mrb[50].mxu0 }
0x1962   :  { %1876 = vst [vmem:[%s3017_s11 + $0x10] sm:$0xff] %v1852_v50  ;;  %v1855_v53 = vadd.f32 %v2272_v52, %v1971_v43  ;;  %v1846_v54 = vpop.f32.mrb[51].mxu0 }
0x1963   :  { %1874 = vst [vmem:[%s3017_s11] sm:$0xff] %v1844_v51  ;;  %v1847_v55 = vadd.f32 %v1971_v43, %v1846_v54 }
0x1964   :  { %1877 = vst [vmem:[%s3017_s11 + $0x18] sm:$0xff] %v1855_v53 }
0x1965   :  { %1875 = vst [vmem:[%s3017_s11 + $0x8] sm:$0xff] %v1847_v55 }
0x19cc   :  { %v2275_v56 = vpop.f32.mrb[52].mxu0 }
0x19cd   :  { %v1868_v57 = vadd.f32 %v2275_v56, %v1971_v43  ;;  %v1859_v58 = vpop.f32.mrb[53].mxu0 }
0x19ce   :  { %v1860_v60 = vadd.f32 %v1971_v43, %v1859_v58  ;;  %v2276_v22 = vpop.f32.mrb[54].mxu0 }
0x19cf   :  { %1880 = vst [vmem:[%s3017_s11 + $0x30] sm:$0xff] %v1868_v57  ;;  %v1871_v61 = vadd.f32 %v2276_v22, %v1971_v43  ;;  %v1862_v62 = vpop.f32.mrb[55].mxu0 }
0x19d0   :  { %1878 = vst [vmem:[%s3017_s11 + $0x20] sm:$0xff] %v1860_v60  ;;  %v1863_v63 = vadd.f32 %v1971_v43, %v1862_v62 }
0x19d1   :  { %1881 = vst [vmem:[%s3017_s11 + $0x38] sm:$0xff] %v1871_v61 }
0x19d2   :  { %1879 = vst [vmem:[%s3017_s11 + $0x28] sm:$0xff] %v1863_v63 }

</bundles_post_ra>
